<compile_context>
chip_gen: v7x
topology: tpu7x:2x2x1
jax: 0.10.0
libtpu: 0.0.40
codegen_flags: <defaults>
</compile_context>

<pallas_src>
import jax
import jax.numpy as jnp
from jax import lax
from jax.experimental import pallas as pl

# ---- hyper-parameters (small, consistent with the module) -------------------
VOCAB = 64
B = 2            # batch
S = 8            # sequence length
D = 32           # hidden dim
H = 4            # attention heads
HD = D // H      # head dim
MLP = 4 * D      # MLP hidden
E = 16           # embedding_dim
L = 2            # num transformer layers
EPS = 1e-5
BS = B * S
NEG = float(jnp.finfo(jnp.float32).min)   # torch.finfo(dtype).min additive mask
SCALE = 1.0 / float(HD) ** 0.5

# ---- packed-parameter layout constants --------------------------------------
WBIG_COLS = 128 + MLP            # cols [0,3D) = wqkv, cols [128,128+MLP) = w1
BIAS_BASE = 8                    # first per-layer bias row in the small slab
PROJ_ROW = BIAS_BASE + 8 * L     # proj (lane-padded) lives at rows [PROJ_ROW, +D)
SMALL_ROWS = PROJ_ROW + D
SMALL_COLS = 128


# ---- in-kernel helpers -------------------------------------------------------
def _layer_norm(x, gamma, beta):
    mu = jnp.mean(x, axis=-1, keepdims=True)
    var = jnp.mean(jnp.square(x - mu), axis=-1, keepdims=True)
    return (x - mu) * lax.rsqrt(var + EPS) * gamma + beta


def _erf(x):
    # Abramowitz & Stegun 7.1.26 rational approximation (|err| <= 1.5e-7),
    # built only from ops with guaranteed Mosaic lowerings.
    p = 0.3275911
    a1, a2, a3, a4, a5 = (0.254829592, -0.284496736, 1.421413741,
                          -1.453152027, 1.061405429)
    ax = jnp.abs(x)
    t = 1.0 / (1.0 + p * ax)
    poly = ((((a5 * t + a4) * t + a3) * t + a2) * t + a1) * t
    y = 1.0 - poly * jnp.exp(-ax * ax)
    return jnp.where(x >= 0.0, y, -y)


def _gelu_exact(x):
    return 0.5 * x * (1.0 + _erf(x * 0.7071067811865476))


# ---- the fused kernel: whole forward pass, fully 2-D, one launch -------------
def _fused_kernel(ids_ref, mask_ref, emb_ref, wbig_ref, wnarrow_ref, small_ref,
                  out_ref):
    f32 = jnp.float32

    # -- embed_text: one-hot token gather (MXU) + positional add + LayerNorm --
    ids = ids_ref[...]                                              # (BS, 1) int32
    onehot = (ids == lax.broadcasted_iota(jnp.int32, (BS, VOCAB), 1)).astype(f32)
    x = jnp.dot(onehot, emb_ref[0:VOCAB, :], preferred_element_type=f32)
    pos = emb_ref[VOCAB:VOCAB + S, :]                               # (S, D)
    x = x + jnp.concatenate([pos] * B, axis=0)                      # tile over batch
    x = _layer_norm(x, small_ref[0:1, 0:D], small_ref[1:2, 0:D])    # (BS, D)

    # per-head-tiled additive attention mask + pooling matrix (from wrapper)
    amask = mask_ref[0:H * BS, :]                                   # (H*BS, BS)
    pool_mat = mask_ref[H * BS:H * BS + B, :]                       # (B, BS)

    # head selector: head_mask[h*BS + r, c] = 1 iff column c belongs to head h
    col = lax.broadcasted_iota(jnp.int32, (BS, D), 1)
    head_mask = jnp.concatenate(
        [jnp.logical_and(col >= h * HD, col < (h + 1) * HD).astype(f32)
         for h in range(H)], axis=0)                                # (H*BS, D)

    for l in range(L):                 # static unroll; weights VMEM-resident
        r = BIAS_BASE + 8 * l
        bqkv = small_ref[r:r + 1, 0:3 * D]
        bo = small_ref[r + 1:r + 2, 0:D]
        b1 = small_ref[r + 2:r + 3, 0:MLP]
        b2 = small_ref[r + 3:r + 4, 0:D]
        ln1_g = small_ref[r + 4:r + 5, 0:D]
        ln1_b = small_ref[r + 5:r + 6, 0:D]
        ln2_g = small_ref[r + 6:r + 7, 0:D]
        ln2_b = small_ref[r + 7:r + 8, 0:D]

        # ---- multi-head self-attention (all 2-D; heads batched on sublanes) --
        qkv = jnp.dot(x, wbig_ref[l, :, 0:3 * D],
                      preferred_element_type=f32) + bqkv            # (BS, 3D)
        q = qkv[:, 0:D] * SCALE
        k = qkv[:, D:2 * D]
        v = qkv[:, 2 * D:3 * D]

        # all-head scores in ONE matmul: replicate q along sublanes, zero the
        # other heads' columns, contract against full k (A @ B^T pattern).
        q_stk = jnp.concatenate([q] * H, axis=0) * head_mask        # (H*BS, D)
        s = lax.dot_general(q_stk, k, (((1,), (1,)), ((), ())),
                            preferred_element_type=f32)             # (H*BS, BS)
        s = s + amask

        # ONE softmax for all heads (exact normalization for torch parity)
        s = s - jnp.max(s, axis=-1, keepdims=True)
        p = jnp.exp(s)
        p = p / jnp.sum(p, axis=-1, keepdims=True)

        # all-head context in ONE matmul; fold head sublane-blocks back to lanes
        ctx_stk = jnp.dot(p, v, preferred_element_type=f32) * head_mask  # (H*BS, D)
        ctx = (ctx_stk[0 * BS:1 * BS] + ctx_stk[1 * BS:2 * BS] +
               ctx_stk[2 * BS:3 * BS] + ctx_stk[3 * BS:4 * BS])     # (BS, D)

        attn = jnp.dot(ctx, wnarrow_ref[l, 0:D, :],
                       preferred_element_type=f32) + bo             # single Wo matmul
        x = _layer_norm(x + attn, ln1_g, ln1_b)

        # ---- MLP ----
        h1 = jnp.dot(x, wbig_ref[l, :, 128:128 + MLP],
                     preferred_element_type=f32) + b1               # (BS, MLP)
        h1 = _gelu_exact(h1)
        h2 = jnp.dot(h1, wnarrow_ref[l, D:D + MLP, :],
                     preferred_element_type=f32) + b2               # (BS, D)
        x = _layer_norm(x + h2, ln2_g, ln2_b)

    # ---- masked mean-pool + projection (plain 2-D matmuls, no reshapes) ----
    pooled = jnp.dot(pool_mat, x, preferred_element_type=f32)       # (B, D)
    emb = jnp.dot(pooled, small_ref[PROJ_ROW:PROJ_ROW + D, 0:D],
                  preferred_element_type=f32)                       # (B, D); cols E:D = 0

    # single combined output slab: rows 0:BS features, rows BS:BS+B embeddings
    out_ref[...] = jnp.concatenate([x, emb], axis=0)                # (BS+B, D)


# ---- parameters (deterministic synthetic init) --------------------------------
def init_params(key):
    std = 0.02
    ks = jax.random.split(key, 3 + 5 * L)
    ln_init = jnp.stack([jnp.ones((D,), jnp.float32),
                         jnp.zeros((D,), jnp.float32)])             # [gamma; beta]
    params = {
        "word_emb": std * jax.random.normal(ks[0], (VOCAB, D), jnp.float32),
        "pos_emb": std * jax.random.normal(ks[1], (S, D), jnp.float32),
        "emb_ln": ln_init,
        "proj": std * jax.random.normal(ks[2], (D, E), jnp.float32),
    }
    wqkv, bqkv, wo, bo, ln1, w1, b1, w2, b2, ln2 = ([] for _ in range(10))
    for l in range(L):
        k = ks[3 + 5 * l: 3 + 5 * (l + 1)]
        wqkv.append(std * jax.random.normal(k[0], (D, 3 * D), jnp.float32))
        bqkv.append(std * jax.random.normal(k[1], (3 * D,), jnp.float32))
        wo.append(std * jax.random.normal(k[2], (D, D), jnp.float32))
        bo.append(jnp.zeros((D,), jnp.float32))
        ln1.append(ln_init)
        w1.append(std * jax.random.normal(k[3], (D, MLP), jnp.float32))
        b1.append(jnp.zeros((MLP,), jnp.float32))
        w2.append(std * jax.random.normal(k[4], (MLP, D), jnp.float32))
        b2.append(jnp.zeros((D,), jnp.float32))
        ln2.append(ln_init)
    params.update(
        wqkv=jnp.stack(wqkv), bqkv=jnp.stack(bqkv), wo=jnp.stack(wo),
        bo=jnp.stack(bo), ln1=jnp.stack(ln1), w1=jnp.stack(w1),
        b1=jnp.stack(b1), w2=jnp.stack(w2), b2=jnp.stack(b2), ln2=jnp.stack(ln2))
    return params


def pack_params(params):
    """Pack all weights into 4 slabs so the kernel takes 6 inputs total."""
    # word + positional embeddings, sublane-concatenated  -> (VOCAB+S, D)
    emb_pack = jnp.concatenate([params["word_emb"], params["pos_emb"]], axis=0)

    # "wide" per-layer weights: wqkv in cols [0,3D), w1 in cols [128,128+MLP)
    wbig = jnp.zeros((L, D, WBIG_COLS), jnp.float32)
    wbig = wbig.at[:, :, 0:3 * D].set(params["wqkv"])
    wbig = wbig.at[:, :, 128:128 + MLP].set(params["w1"])

    # "narrow" per-layer weights: [wo ; w2] -> (L, D+MLP, D)
    wnarrow = jnp.concatenate([params["wo"], params["w2"]], axis=1)

    # biases, LN params and the lane-padded projection in one (56,128) slab
    small = jnp.zeros((SMALL_ROWS, SMALL_COLS), jnp.float32)
    small = small.at[0, 0:D].set(params["emb_ln"][0])
    small = small.at[1, 0:D].set(params["emb_ln"][1])
    for l in range(L):
        r = BIAS_BASE + 8 * l
        small = small.at[r, 0:3 * D].set(params["bqkv"][l])
        small = small.at[r + 1, 0:D].set(params["bo"][l])
        small = small.at[r + 2, 0:MLP].set(params["b1"][l])
        small = small.at[r + 3, 0:D].set(params["b2"][l])
        small = small.at[r + 4, 0:D].set(params["ln1"][l][0])
        small = small.at[r + 5, 0:D].set(params["ln1"][l][1])
        small = small.at[r + 6, 0:D].set(params["ln2"][l][0])
        small = small.at[r + 7, 0:D].set(params["ln2"][l][1])
    small = small.at[PROJ_ROW:PROJ_ROW + D, 0:E].set(params["proj"])

    return {"emb": emb_pack, "wbig": wbig, "wnarrow": wnarrow, "small": small}


# ---- advisory cost estimate for XLA scheduling --------------------------------
_FLOPS = (2 * BS * VOCAB * D
          + L * (2 * BS * D * 3 * D          # qkv
                 + 2 * H * BS * D * BS       # scores
                 + 2 * H * BS * BS * D       # context
                 + 2 * BS * D * D            # wo
                 + 2 * BS * D * MLP          # w1
                 + 2 * BS * MLP * D)         # w2
          + 2 * B * BS * D + 2 * B * D * D)  # pool + proj
_TRANS = L * (H * BS * BS + BS * MLP)        # softmax exp + gelu exp
_BYTES = 4 * (BS + (H * BS + B) * BS + (VOCAB + S) * D
              + L * D * WBIG_COLS + L * (D + MLP) * D
              + SMALL_ROWS * SMALL_COLS + (BS + B) * D)
_COST = pl.CostEstimate(flops=int(_FLOPS), transcendentals=int(_TRANS),
                        bytes_accessed=int(_BYTES))


# ---- full forward: (features, embeddings) -------------------------------------
@jax.jit
def cml_text_encoder_ane(packed, input_ids, attention_mask):
    ids2 = input_ids.astype(jnp.int32).reshape(BS, 1)
    m = attention_mask.astype(jnp.float32)                           # (B, S)

    # block-diagonal additive attention mask over flattened (B*S) tokens,
    # pre-tiled over heads so the kernel adds it straight to (H*BS, BS) scores
    col_batch = jnp.arange(BS, dtype=jnp.int32) // S                 # (BS,)
    same_batch = (col_batch[:, None] == col_batch[None, :]).astype(jnp.float32)
    key_valid = m.reshape(1, BS)
    allowed = same_batch * key_valid                                 # (BS, BS)
    amask = jnp.tile((1.0 - allowed) * NEG, (H, 1))                  # (H*BS, BS)

    # masked-mean pooling matrix (1/len folded in, guarded vs fully-masked rows)
    denom = jnp.maximum(jnp.sum(m, axis=1, keepdims=True), 1.0)      # (B, 1)
    weights = (m / denom).reshape(1, BS)                             # (1, BS)
    sel = (jnp.arange(B, dtype=jnp.int32)[:, None] == col_batch[None, :]
           ).astype(jnp.float32)                                     # (B, BS)
    pool_mat = sel * weights                                         # (B, BS)

    mask_pack = jnp.concatenate([amask, pool_mat], axis=0)           # (H*BS+B, BS)

    out = pl.pallas_call(
        _fused_kernel,
        out_shape=jax.ShapeDtypeStruct((BS + B, D), jnp.float32),
        cost_estimate=_COST,
    )(ids2, mask_pack, packed["emb"], packed["wbig"], packed["wnarrow"],
      packed["small"])

    features = out[0:BS, :].reshape(B, S, D)                         # (B, S, D)
    embeddings = out[BS:BS + B, 0:E]                                 # (B, E)
    return features, embeddings


if __name__ == "__main__":
    key = jax.random.PRNGKey(0)
    pkey, ikey = jax.random.split(key)
    params = init_params(pkey)
    packed = pack_params(params)

    input_ids = jax.random.randint(ikey, (B, S), 0, VOCAB, dtype=jnp.int32)
    lengths = jnp.array([S, 5], dtype=jnp.int32)
    attention_mask = (jnp.arange(S)[None, :] < lengths[:, None]).astype(jnp.int32)

    features, embeddings = cml_text_encoder_ane(packed, input_ids, attention_mask)
    jax.block_until_ready((features, embeddings))

    assert features.shape == (B, S, D) and features.dtype == jnp.float32
    assert embeddings.shape == (B, E) and embeddings.dtype == jnp.float32
    assert bool(jnp.all(jnp.isfinite(features))) and bool(jnp.all(jnp.isfinite(embeddings)))
    print("KERNEL_OK")
</pallas_src>

<mosaic_0001>
module attributes {stable_mosaic.version = 11 : i64} {
  func.func @_fused_kernel(%arg0: memref<16x1xi32, #tpu.memory_space<vmem>>, %arg1: memref<66x16xf32, #tpu.memory_space<vmem>>, %arg2: memref<72x32xf32, #tpu.memory_space<vmem>>, %arg3: memref<2x32x256xf32, #tpu.memory_space<vmem>>, %arg4: memref<2x160x32xf32, #tpu.memory_space<vmem>>, %arg5: memref<56x128xf32, #tpu.memory_space<vmem>>, %arg6: memref<18x32xf32, #tpu.memory_space<vmem>>) attributes {dimension_semantics = [], scalar_prefetch = 0 : i64, scratch_operands = 0 : i64, tpu.core_type = #tpu.core_type<tc>} {
    %c0 = arith.constant 0 : index
    %c0_0 = arith.constant 0 : index
    %0 = vector.load %arg0[%c0, %c0_0] : memref<16x1xi32, #tpu.memory_space<vmem>>, vector<16x1xi32>
    %1 = tpu.iota {dimensions = array<i32: 1>} : vector<16x64xi32>
    %2 = vector.broadcast %0 : vector<16x1xi32> to vector<16x64xi32>
    %3 = arith.cmpi eq, %2, %1 : vector<16x64xi32>
    %4 = arith.extui %3 : vector<16x64xi1> to vector<16x64xi32>
    %5 = arith.sitofp %4 : vector<16x64xi32> to vector<16x64xf32>
    %c0_1 = arith.constant 0 : index
    %c0_2 = arith.constant 0 : index
    %6 = vector.load %arg2[%c0_1, %c0_2] : memref<72x32xf32, #tpu.memory_space<vmem>>, vector<64x32xf32>
    %cst = arith.constant dense<0.000000e+00> : vector<16x32xf32>
    %7 = tpu.matmul %5, %6, %cst {dimension_numbers = #tpu.dot_dimension_numbers<[1], [0], [0], [1], [0, 0, 1, 1], [], []>} : vector<16x64xf32>, vector<64x32xf32>, vector<16x32xf32> -> vector<16x32xf32>
    %c64 = arith.constant 64 : index
    %c0_3 = arith.constant 0 : index
    %8 = vector.load %arg2[%c64, %c0_3] : memref<72x32xf32, #tpu.memory_space<vmem>>, vector<8x32xf32>
    %9 = tpu.concatenate %8, %8 in 0 : vector<8x32xf32>, vector<8x32xf32> -> vector<16x32xf32>
    %10 = arith.addf %7, %9 : vector<16x32xf32>
    %c0_4 = arith.constant 0 : index
    %c0_5 = arith.constant 0 : index
    %11 = vector.load %arg5[%c0_4, %c0_5] : memref<56x128xf32, #tpu.memory_space<vmem>>, vector<1x32xf32>
    %c1 = arith.constant 1 : index
    %c0_6 = arith.constant 0 : index
    %12 = vector.load %arg5[%c1, %c0_6] : memref<56x128xf32, #tpu.memory_space<vmem>>, vector<1x32xf32>
    %cst_7 = arith.constant dense<0.000000e+00> : vector<16xf32>
    %13 = vector.multi_reduction <add>, %10, %cst_7 [1] : vector<16x32xf32> to vector<16xf32>
    %14 = vector.shape_cast %13 : vector<16xf32> to vector<16x1xf32>
    %cst_8 = arith.constant 3.200000e+01 : f32
    %15 = vector.broadcast %cst_8 : f32 to vector<16x1xf32>
    %16 = arith.divf %14, %15 : vector<16x1xf32>
    %17 = vector.broadcast %16 : vector<16x1xf32> to vector<16x32xf32>
    %18 = arith.subf %10, %17 : vector<16x32xf32>
    %19 = arith.mulf %18, %18 : vector<16x32xf32>
    %cst_9 = arith.constant dense<0.000000e+00> : vector<16xf32>
    %20 = vector.multi_reduction <add>, %19, %cst_9 [1] : vector<16x32xf32> to vector<16xf32>
    %21 = vector.shape_cast %20 : vector<16xf32> to vector<16x1xf32>
    %cst_10 = arith.constant 3.200000e+01 : f32
    %22 = vector.broadcast %cst_10 : f32 to vector<16x1xf32>
    %23 = arith.divf %21, %22 : vector<16x1xf32>
    %24 = vector.broadcast %16 : vector<16x1xf32> to vector<16x32xf32>
    %25 = arith.subf %10, %24 : vector<16x32xf32>
    %cst_11 = arith.constant 9.99999974E-6 : f32
    %26 = vector.broadcast %cst_11 : f32 to vector<16x1xf32>
    %27 = arith.addf %23, %26 : vector<16x1xf32>
    %28 = math.rsqrt %27 : vector<16x1xf32>
    %29 = vector.broadcast %28 : vector<16x1xf32> to vector<16x32xf32>
    %30 = arith.mulf %25, %29 : vector<16x32xf32>
    %31 = vector.broadcast %11 : vector<1x32xf32> to vector<16x32xf32>
    %32 = arith.mulf %30, %31 : vector<16x32xf32>
    %33 = vector.broadcast %12 : vector<1x32xf32> to vector<16x32xf32>
    %34 = arith.addf %32, %33 : vector<16x32xf32>
    %c0_12 = arith.constant 0 : index
    %c0_13 = arith.constant 0 : index
    %35 = vector.load %arg1[%c0_12, %c0_13] : memref<66x16xf32, #tpu.memory_space<vmem>>, vector<64x16xf32>
    %c64_14 = arith.constant 64 : index
    %c0_15 = arith.constant 0 : index
    %36 = vector.load %arg1[%c64_14, %c0_15] : memref<66x16xf32, #tpu.memory_space<vmem>>, vector<2x16xf32>
    %37 = tpu.iota {dimensions = array<i32: 1>} : vector<16x32xi32>
    %c0_i32 = arith.constant 0 : i32
    %38 = vector.broadcast %c0_i32 : i32 to vector<16x32xi32>
    %39 = arith.cmpi sge, %37, %38 : vector<16x32xi32>
    %c8_i32 = arith.constant 8 : i32
    %40 = vector.broadcast %c8_i32 : i32 to vector<16x32xi32>
    %41 = arith.cmpi slt, %37, %40 : vector<16x32xi32>
    %42 = arith.andi %39, %41 : vector<16x32xi1>
    %43 = arith.extui %42 : vector<16x32xi1> to vector<16x32xi32>
    %44 = arith.sitofp %43 : vector<16x32xi32> to vector<16x32xf32>
    %c8_i32_16 = arith.constant 8 : i32
    %45 = vector.broadcast %c8_i32_16 : i32 to vector<16x32xi32>
    %46 = arith.cmpi sge, %37, %45 : vector<16x32xi32>
    %c16_i32 = arith.constant 16 : i32
    %47 = vector.broadcast %c16_i32 : i32 to vector<16x32xi32>
    %48 = arith.cmpi slt, %37, %47 : vector<16x32xi32>
    %49 = arith.andi %46, %48 : vector<16x32xi1>
    %50 = arith.extui %49 : vector<16x32xi1> to vector<16x32xi32>
    %51 = arith.sitofp %50 : vector<16x32xi32> to vector<16x32xf32>
    %c16_i32_17 = arith.constant 16 : i32
    %52 = vector.broadcast %c16_i32_17 : i32 to vector<16x32xi32>
    %53 = arith.cmpi sge, %37, %52 : vector<16x32xi32>
    %c24_i32 = arith.constant 24 : i32
    %54 = vector.broadcast %c24_i32 : i32 to vector<16x32xi32>
    %55 = arith.cmpi slt, %37, %54 : vector<16x32xi32>
    %56 = arith.andi %53, %55 : vector<16x32xi1>
    %57 = arith.extui %56 : vector<16x32xi1> to vector<16x32xi32>
    %58 = arith.sitofp %57 : vector<16x32xi32> to vector<16x32xf32>
    %c24_i32_18 = arith.constant 24 : i32
    %59 = vector.broadcast %c24_i32_18 : i32 to vector<16x32xi32>
    %60 = arith.cmpi sge, %37, %59 : vector<16x32xi32>
    %c32_i32 = arith.constant 32 : i32
    %61 = vector.broadcast %c32_i32 : i32 to vector<16x32xi32>
    %62 = arith.cmpi slt, %37, %61 : vector<16x32xi32>
    %63 = arith.andi %60, %62 : vector<16x32xi1>
    %64 = arith.extui %63 : vector<16x32xi1> to vector<16x32xi32>
    %65 = arith.sitofp %64 : vector<16x32xi32> to vector<16x32xf32>
    %66 = tpu.concatenate %44, %51, %58, %65 in 0 : vector<16x32xf32>, vector<16x32xf32>, vector<16x32xf32>, vector<16x32xf32> -> vector<64x32xf32>
    %c8 = arith.constant 8 : index
    %c0_19 = arith.constant 0 : index
    %67 = vector.load %arg5[%c8, %c0_19] : memref<56x128xf32, #tpu.memory_space<vmem>>, vector<1x96xf32>
    %c9 = arith.constant 9 : index
    %c0_20 = arith.constant 0 : index
    %68 = vector.load %arg5[%c9, %c0_20] : memref<56x128xf32, #tpu.memory_space<vmem>>, vector<1x32xf32>
    %c10 = arith.constant 10 : index
    %c0_21 = arith.constant 0 : index
    %69 = vector.load %arg5[%c10, %c0_21] : memref<56x128xf32, #tpu.memory_space<vmem>>, vector<1x128xf32>
    %c11 = arith.constant 11 : index
    %c0_22 = arith.constant 0 : index
    %70 = vector.load %arg5[%c11, %c0_22] : memref<56x128xf32, #tpu.memory_space<vmem>>, vector<1x32xf32>
    %c12 = arith.constant 12 : index
    %c0_23 = arith.constant 0 : index
    %71 = vector.load %arg5[%c12, %c0_23] : memref<56x128xf32, #tpu.memory_space<vmem>>, vector<1x32xf32>
    %c13 = arith.constant 13 : index
    %c0_24 = arith.constant 0 : index
    %72 = vector.load %arg5[%c13, %c0_24] : memref<56x128xf32, #tpu.memory_space<vmem>>, vector<1x32xf32>
    %c14 = arith.constant 14 : index
    %c0_25 = arith.constant 0 : index
    %73 = vector.load %arg5[%c14, %c0_25] : memref<56x128xf32, #tpu.memory_space<vmem>>, vector<1x32xf32>
    %c15 = arith.constant 15 : index
    %c0_26 = arith.constant 0 : index
    %74 = vector.load %arg5[%c15, %c0_26] : memref<56x128xf32, #tpu.memory_space<vmem>>, vector<1x32xf32>
    %c0_27 = arith.constant 0 : index
    %c0_28 = arith.constant 0 : index
    %c0_29 = arith.constant 0 : index
    %75 = vector.load %arg3[%c0_27, %c0_28, %c0_29] : memref<2x32x256xf32, #tpu.memory_space<vmem>>, vector<1x32x96xf32>
    %76 = vector.shape_cast %75 : vector<1x32x96xf32> to vector<32x96xf32>
    %cst_30 = arith.constant dense<0.000000e+00> : vector<16x96xf32>
    %77 = tpu.matmul %34, %76, %cst_30 {dimension_numbers = #tpu.dot_dimension_numbers<[1], [0], [0], [1], [0, 0, 1, 1], [], []>} : vector<16x32xf32>, vector<32x96xf32>, vector<16x96xf32> -> vector<16x96xf32>
    %78 = vector.broadcast %67 : vector<1x96xf32> to vector<16x96xf32>
    %79 = arith.addf %77, %78 : vector<16x96xf32>
    %80 = vector.extract_strided_slice %79 {offsets = [0, 0], sizes = [16, 32], strides = [1, 1]} : vector<16x96xf32> to vector<16x32xf32>
    %cst_31 = arith.constant 0.353553385 : f32
    %81 = vector.broadcast %cst_31 : f32 to vector<16x32xf32>
    %82 = arith.mulf %80, %81 : vector<16x32xf32>
    %83 = vector.extract_strided_slice %79 {offsets = [0, 32], sizes = [16, 32], strides = [1, 1]} : vector<16x96xf32> to vector<16x32xf32>
    %84 = vector.extract_strided_slice %79 {offsets = [0, 64], sizes = [16, 32], strides = [1, 1]} : vector<16x96xf32> to vector<16x32xf32>
    %85 = tpu.concatenate %82, %82, %82, %82 in 0 : vector<16x32xf32>, vector<16x32xf32>, vector<16x32xf32>, vector<16x32xf32> -> vector<64x32xf32>
    %86 = arith.mulf %85, %66 : vector<64x32xf32>
    %cst_32 = arith.constant dense<0.000000e+00> : vector<64x16xf32>
    %87 = tpu.matmul %86, %83, %cst_32 {dimension_numbers = #tpu.dot_dimension_numbers<[1], [1], [0], [0], [0, 0, 1, 0], [], []>} : vector<64x32xf32>, vector<16x32xf32>, vector<64x16xf32> -> vector<64x16xf32>
    %88 = arith.addf %87, %35 : vector<64x16xf32>
    %cst_33 = arith.constant dense<0xFF800000> : vector<64xf32>
    %89 = vector.multi_reduction <maximumf>, %88, %cst_33 [1] : vector<64x16xf32> to vector<64xf32>
    %90 = vector.shape_cast %89 : vector<64xf32> to vector<64x1xf32>
    %91 = vector.broadcast %90 : vector<64x1xf32> to vector<64x16xf32>
    %92 = arith.subf %88, %91 : vector<64x16xf32>
    %93 = math.exp %92 : vector<64x16xf32>
    %cst_34 = arith.constant dense<0.000000e+00> : vector<64xf32>
    %94 = vector.multi_reduction <add>, %93, %cst_34 [1] : vector<64x16xf32> to vector<64xf32>
    %95 = vector.shape_cast %94 : vector<64xf32> to vector<64x1xf32>
    %96 = vector.broadcast %95 : vector<64x1xf32> to vector<64x16xf32>
    %97 = arith.divf %93, %96 : vector<64x16xf32>
    %cst_35 = arith.constant dense<0.000000e+00> : vector<64x32xf32>
    %98 = tpu.matmul %97, %84, %cst_35 {dimension_numbers = #tpu.dot_dimension_numbers<[1], [0], [0], [1], [0, 0, 1, 1], [], []>} : vector<64x16xf32>, vector<16x32xf32>, vector<64x32xf32> -> vector<64x32xf32>
    %99 = arith.mulf %98, %66 : vector<64x32xf32>
    %100 = vector.extract_strided_slice %99 {offsets = [0, 0], sizes = [16, 32], strides = [1, 1]} : vector<64x32xf32> to vector<16x32xf32>
    %101 = vector.extract_strided_slice %99 {offsets = [16, 0], sizes = [16, 32], strides = [1, 1]} : vector<64x32xf32> to vector<16x32xf32>
    %102 = arith.addf %100, %101 : vector<16x32xf32>
    %103 = vector.extract_strided_slice %99 {offsets = [32, 0], sizes = [16, 32], strides = [1, 1]} : vector<64x32xf32> to vector<16x32xf32>
    %104 = arith.addf %102, %103 : vector<16x32xf32>
    %105 = vector.extract_strided_slice %99 {offsets = [48, 0], sizes = [16, 32], strides = [1, 1]} : vector<64x32xf32> to vector<16x32xf32>
    %106 = arith.addf %104, %105 : vector<16x32xf32>
    %c0_36 = arith.constant 0 : index
    %c0_37 = arith.constant 0 : index
    %c0_38 = arith.constant 0 : index
    %107 = vector.load %arg4[%c0_36, %c0_37, %c0_38] : memref<2x160x32xf32, #tpu.memory_space<vmem>>, vector<1x32x32xf32>
    %108 = vector.shape_cast %107 : vector<1x32x32xf32> to vector<32x32xf32>
    %cst_39 = arith.constant dense<0.000000e+00> : vector<16x32xf32>
    %109 = tpu.matmul %106, %108, %cst_39 {dimension_numbers = #tpu.dot_dimension_numbers<[1], [0], [0], [1], [0, 0, 1, 1], [], []>} : vector<16x32xf32>, vector<32x32xf32>, vector<16x32xf32> -> vector<16x32xf32>
    %110 = vector.broadcast %68 : vector<1x32xf32> to vector<16x32xf32>
    %111 = arith.addf %109, %110 : vector<16x32xf32>
    %112 = arith.addf %34, %111 : vector<16x32xf32>
    %cst_40 = arith.constant dense<0.000000e+00> : vector<16xf32>
    %113 = vector.multi_reduction <add>, %112, %cst_40 [1] : vector<16x32xf32> to vector<16xf32>
    %114 = vector.shape_cast %113 : vector<16xf32> to vector<16x1xf32>
    %cst_41 = arith.constant 3.200000e+01 : f32
    %115 = vector.broadcast %cst_41 : f32 to vector<16x1xf32>
    %116 = arith.divf %114, %115 : vector<16x1xf32>
    %117 = vector.broadcast %116 : vector<16x1xf32> to vector<16x32xf32>
    %118 = arith.subf %112, %117 : vector<16x32xf32>
    %119 = arith.mulf %118, %118 : vector<16x32xf32>
    %cst_42 = arith.constant dense<0.000000e+00> : vector<16xf32>
    %120 = vector.multi_reduction <add>, %119, %cst_42 [1] : vector<16x32xf32> to vector<16xf32>
    %121 = vector.shape_cast %120 : vector<16xf32> to vector<16x1xf32>
    %cst_43 = arith.constant 3.200000e+01 : f32
    %122 = vector.broadcast %cst_43 : f32 to vector<16x1xf32>
    %123 = arith.divf %121, %122 : vector<16x1xf32>
    %124 = vector.broadcast %116 : vector<16x1xf32> to vector<16x32xf32>
    %125 = arith.subf %112, %124 : vector<16x32xf32>
    %cst_44 = arith.constant 9.99999974E-6 : f32
    %126 = vector.broadcast %cst_44 : f32 to vector<16x1xf32>
    %127 = arith.addf %123, %126 : vector<16x1xf32>
    %128 = math.rsqrt %127 : vector<16x1xf32>
    %129 = vector.broadcast %128 : vector<16x1xf32> to vector<16x32xf32>
    %130 = arith.mulf %125, %129 : vector<16x32xf32>
    %131 = vector.broadcast %71 : vector<1x32xf32> to vector<16x32xf32>
    %132 = arith.mulf %130, %131 : vector<16x32xf32>
    %133 = vector.broadcast %72 : vector<1x32xf32> to vector<16x32xf32>
    %134 = arith.addf %132, %133 : vector<16x32xf32>
    %c0_45 = arith.constant 0 : index
    %c0_46 = arith.constant 0 : index
    %c128 = arith.constant 128 : index
    %135 = vector.load %arg3[%c0_45, %c0_46, %c128] : memref<2x32x256xf32, #tpu.memory_space<vmem>>, vector<1x32x128xf32>
    %136 = vector.shape_cast %135 : vector<1x32x128xf32> to vector<32x128xf32>
    %cst_47 = arith.constant dense<0.000000e+00> : vector<16x128xf32>
    %137 = tpu.matmul %134, %136, %cst_47 {dimension_numbers = #tpu.dot_dimension_numbers<[1], [0], [0], [1], [0, 0, 1, 1], [], []>} : vector<16x32xf32>, vector<32x128xf32>, vector<16x128xf32> -> vector<16x128xf32>
    %138 = vector.broadcast %69 : vector<1x128xf32> to vector<16x128xf32>
    %139 = arith.addf %137, %138 : vector<16x128xf32>
    %cst_48 = arith.constant 5.000000e-01 : f32
    %140 = vector.broadcast %cst_48 : f32 to vector<16x128xf32>
    %141 = arith.mulf %140, %139 : vector<16x128xf32>
    %cst_49 = arith.constant 0.707106769 : f32
    %142 = vector.broadcast %cst_49 : f32 to vector<16x128xf32>
    %143 = arith.mulf %139, %142 : vector<16x128xf32>
    %144 = math.absf %143 : vector<16x128xf32>
    %cst_50 = arith.constant 0.327591091 : f32
    %145 = vector.broadcast %cst_50 : f32 to vector<16x128xf32>
    %146 = arith.mulf %145, %144 : vector<16x128xf32>
    %cst_51 = arith.constant 1.000000e+00 : f32
    %147 = vector.broadcast %cst_51 : f32 to vector<16x128xf32>
    %148 = arith.addf %147, %146 : vector<16x128xf32>
    %cst_52 = arith.constant 1.000000e+00 : f32
    %149 = vector.broadcast %cst_52 : f32 to vector<16x128xf32>
    %150 = arith.divf %149, %148 : vector<16x128xf32>
    %cst_53 = arith.constant 1.06140542 : f32
    %151 = vector.broadcast %cst_53 : f32 to vector<16x128xf32>
    %152 = arith.mulf %151, %150 : vector<16x128xf32>
    %cst_54 = arith.constant -1.45315206 : f32
    %153 = vector.broadcast %cst_54 : f32 to vector<16x128xf32>
    %154 = arith.addf %152, %153 : vector<16x128xf32>
    %155 = arith.mulf %154, %150 : vector<16x128xf32>
    %cst_55 = arith.constant 1.42141378 : f32
    %156 = vector.broadcast %cst_55 : f32 to vector<16x128xf32>
    %157 = arith.addf %155, %156 : vector<16x128xf32>
    %158 = arith.mulf %157, %150 : vector<16x128xf32>
    %cst_56 = arith.constant -0.284496725 : f32
    %159 = vector.broadcast %cst_56 : f32 to vector<16x128xf32>
    %160 = arith.addf %158, %159 : vector<16x128xf32>
    %161 = arith.mulf %160, %150 : vector<16x128xf32>
    %cst_57 = arith.constant 0.254829586 : f32
    %162 = vector.broadcast %cst_57 : f32 to vector<16x128xf32>
    %163 = arith.addf %161, %162 : vector<16x128xf32>
    %164 = arith.mulf %163, %150 : vector<16x128xf32>
    %cst_58 = arith.constant 0.000000e+00 : f32
    %165 = vector.broadcast %cst_58 : f32 to vector<16x128xf32>
    %166 = arith.subf %165, %144 : vector<16x128xf32>
    %167 = arith.mulf %166, %144 : vector<16x128xf32>
    %168 = math.exp %167 : vector<16x128xf32>
    %169 = arith.mulf %164, %168 : vector<16x128xf32>
    %cst_59 = arith.constant 1.000000e+00 : f32
    %170 = vector.broadcast %cst_59 : f32 to vector<16x128xf32>
    %171 = arith.subf %170, %169 : vector<16x128xf32>
    %cst_60 = arith.constant 0.000000e+00 : f32
    %172 = vector.broadcast %cst_60 : f32 to vector<16x128xf32>
    %173 = arith.cmpf oge, %143, %172 : vector<16x128xf32>
    %cst_61 = arith.constant 0.000000e+00 : f32
    %174 = vector.broadcast %cst_61 : f32 to vector<16x128xf32>
    %175 = arith.subf %174, %171 : vector<16x128xf32>
    %176 = arith.select %173, %171, %175 : vector<16x128xi1>, vector<16x128xf32>
    %cst_62 = arith.constant 1.000000e+00 : f32
    %177 = vector.broadcast %cst_62 : f32 to vector<16x128xf32>
    %178 = arith.addf %177, %176 : vector<16x128xf32>
    %179 = arith.mulf %141, %178 : vector<16x128xf32>
    %c0_63 = arith.constant 0 : index
    %c32 = arith.constant 32 : index
    %c0_64 = arith.constant 0 : index
    %180 = vector.load %arg4[%c0_63, %c32, %c0_64] : memref<2x160x32xf32, #tpu.memory_space<vmem>>, vector<1x128x32xf32>
    %181 = vector.shape_cast %180 : vector<1x128x32xf32> to vector<128x32xf32>
    %cst_65 = arith.constant dense<0.000000e+00> : vector<16x32xf32>
    %182 = tpu.matmul %179, %181, %cst_65 {dimension_numbers = #tpu.dot_dimension_numbers<[1], [0], [0], [1], [0, 0, 1, 1], [], []>} : vector<16x128xf32>, vector<128x32xf32>, vector<16x32xf32> -> vector<16x32xf32>
    %183 = vector.broadcast %70 : vector<1x32xf32> to vector<16x32xf32>
    %184 = arith.addf %182, %183 : vector<16x32xf32>
    %185 = arith.addf %134, %184 : vector<16x32xf32>
    %cst_66 = arith.constant dense<0.000000e+00> : vector<16xf32>
    %186 = vector.multi_reduction <add>, %185, %cst_66 [1] : vector<16x32xf32> to vector<16xf32>
    %187 = vector.shape_cast %186 : vector<16xf32> to vector<16x1xf32>
    %cst_67 = arith.constant 3.200000e+01 : f32
    %188 = vector.broadcast %cst_67 : f32 to vector<16x1xf32>
    %189 = arith.divf %187, %188 : vector<16x1xf32>
    %190 = vector.broadcast %189 : vector<16x1xf32> to vector<16x32xf32>
    %191 = arith.subf %185, %190 : vector<16x32xf32>
    %192 = arith.mulf %191, %191 : vector<16x32xf32>
    %cst_68 = arith.constant dense<0.000000e+00> : vector<16xf32>
    %193 = vector.multi_reduction <add>, %192, %cst_68 [1] : vector<16x32xf32> to vector<16xf32>
    %194 = vector.shape_cast %193 : vector<16xf32> to vector<16x1xf32>
    %cst_69 = arith.constant 3.200000e+01 : f32
    %195 = vector.broadcast %cst_69 : f32 to vector<16x1xf32>
    %196 = arith.divf %194, %195 : vector<16x1xf32>
    %197 = vector.broadcast %189 : vector<16x1xf32> to vector<16x32xf32>
    %198 = arith.subf %185, %197 : vector<16x32xf32>
    %cst_70 = arith.constant 9.99999974E-6 : f32
    %199 = vector.broadcast %cst_70 : f32 to vector<16x1xf32>
    %200 = arith.addf %196, %199 : vector<16x1xf32>
    %201 = math.rsqrt %200 : vector<16x1xf32>
    %202 = vector.broadcast %201 : vector<16x1xf32> to vector<16x32xf32>
    %203 = arith.mulf %198, %202 : vector<16x32xf32>
    %204 = vector.broadcast %73 : vector<1x32xf32> to vector<16x32xf32>
    %205 = arith.mulf %203, %204 : vector<16x32xf32>
    %206 = vector.broadcast %74 : vector<1x32xf32> to vector<16x32xf32>
    %207 = arith.addf %205, %206 : vector<16x32xf32>
    %c16 = arith.constant 16 : index
    %c0_71 = arith.constant 0 : index
    %208 = vector.load %arg5[%c16, %c0_71] : memref<56x128xf32, #tpu.memory_space<vmem>>, vector<1x96xf32>
    %c17 = arith.constant 17 : index
    %c0_72 = arith.constant 0 : index
    %209 = vector.load %arg5[%c17, %c0_72] : memref<56x128xf32, #tpu.memory_space<vmem>>, vector<1x32xf32>
    %c18 = arith.constant 18 : index
    %c0_73 = arith.constant 0 : index
    %210 = vector.load %arg5[%c18, %c0_73] : memref<56x128xf32, #tpu.memory_space<vmem>>, vector<1x128xf32>
    %c19 = arith.constant 19 : index
    %c0_74 = arith.constant 0 : index
    %211 = vector.load %arg5[%c19, %c0_74] : memref<56x128xf32, #tpu.memory_space<vmem>>, vector<1x32xf32>
    %c20 = arith.constant 20 : index
    %c0_75 = arith.constant 0 : index
    %212 = vector.load %arg5[%c20, %c0_75] : memref<56x128xf32, #tpu.memory_space<vmem>>, vector<1x32xf32>
    %c21 = arith.constant 21 : index
    %c0_76 = arith.constant 0 : index
    %213 = vector.load %arg5[%c21, %c0_76] : memref<56x128xf32, #tpu.memory_space<vmem>>, vector<1x32xf32>
    %c22 = arith.constant 22 : index
    %c0_77 = arith.constant 0 : index
    %214 = vector.load %arg5[%c22, %c0_77] : memref<56x128xf32, #tpu.memory_space<vmem>>, vector<1x32xf32>
    %c23 = arith.constant 23 : index
    %c0_78 = arith.constant 0 : index
    %215 = vector.load %arg5[%c23, %c0_78] : memref<56x128xf32, #tpu.memory_space<vmem>>, vector<1x32xf32>
    %c1_79 = arith.constant 1 : index
    %c0_80 = arith.constant 0 : index
    %c0_81 = arith.constant 0 : index
    %216 = vector.load %arg3[%c1_79, %c0_80, %c0_81] : memref<2x32x256xf32, #tpu.memory_space<vmem>>, vector<1x32x96xf32>
    %217 = vector.shape_cast %216 : vector<1x32x96xf32> to vector<32x96xf32>
    %cst_82 = arith.constant dense<0.000000e+00> : vector<16x96xf32>
    %218 = tpu.matmul %207, %217, %cst_82 {dimension_numbers = #tpu.dot_dimension_numbers<[1], [0], [0], [1], [0, 0, 1, 1], [], []>} : vector<16x32xf32>, vector<32x96xf32>, vector<16x96xf32> -> vector<16x96xf32>
    %219 = vector.broadcast %208 : vector<1x96xf32> to vector<16x96xf32>
    %220 = arith.addf %218, %219 : vector<16x96xf32>
    %221 = vector.extract_strided_slice %220 {offsets = [0, 0], sizes = [16, 32], strides = [1, 1]} : vector<16x96xf32> to vector<16x32xf32>
    %cst_83 = arith.constant 0.353553385 : f32
    %222 = vector.broadcast %cst_83 : f32 to vector<16x32xf32>
    %223 = arith.mulf %221, %222 : vector<16x32xf32>
    %224 = vector.extract_strided_slice %220 {offsets = [0, 32], sizes = [16, 32], strides = [1, 1]} : vector<16x96xf32> to vector<16x32xf32>
    %225 = vector.extract_strided_slice %220 {offsets = [0, 64], sizes = [16, 32], strides = [1, 1]} : vector<16x96xf32> to vector<16x32xf32>
    %226 = tpu.concatenate %223, %223, %223, %223 in 0 : vector<16x32xf32>, vector<16x32xf32>, vector<16x32xf32>, vector<16x32xf32> -> vector<64x32xf32>
    %227 = arith.mulf %226, %66 : vector<64x32xf32>
    %cst_84 = arith.constant dense<0.000000e+00> : vector<64x16xf32>
    %228 = tpu.matmul %227, %224, %cst_84 {dimension_numbers = #tpu.dot_dimension_numbers<[1], [1], [0], [0], [0, 0, 1, 0], [], []>} : vector<64x32xf32>, vector<16x32xf32>, vector<64x16xf32> -> vector<64x16xf32>
    %229 = arith.addf %228, %35 : vector<64x16xf32>
    %cst_85 = arith.constant dense<0xFF800000> : vector<64xf32>
    %230 = vector.multi_reduction <maximumf>, %229, %cst_85 [1] : vector<64x16xf32> to vector<64xf32>
    %231 = vector.shape_cast %230 : vector<64xf32> to vector<64x1xf32>
    %232 = vector.broadcast %231 : vector<64x1xf32> to vector<64x16xf32>
    %233 = arith.subf %229, %232 : vector<64x16xf32>
    %234 = math.exp %233 : vector<64x16xf32>
    %cst_86 = arith.constant dense<0.000000e+00> : vector<64xf32>
    %235 = vector.multi_reduction <add>, %234, %cst_86 [1] : vector<64x16xf32> to vector<64xf32>
    %236 = vector.shape_cast %235 : vector<64xf32> to vector<64x1xf32>
    %237 = vector.broadcast %236 : vector<64x1xf32> to vector<64x16xf32>
    %238 = arith.divf %234, %237 : vector<64x16xf32>
    %cst_87 = arith.constant dense<0.000000e+00> : vector<64x32xf32>
    %239 = tpu.matmul %238, %225, %cst_87 {dimension_numbers = #tpu.dot_dimension_numbers<[1], [0], [0], [1], [0, 0, 1, 1], [], []>} : vector<64x16xf32>, vector<16x32xf32>, vector<64x32xf32> -> vector<64x32xf32>
    %240 = arith.mulf %239, %66 : vector<64x32xf32>
    %241 = vector.extract_strided_slice %240 {offsets = [0, 0], sizes = [16, 32], strides = [1, 1]} : vector<64x32xf32> to vector<16x32xf32>
    %242 = vector.extract_strided_slice %240 {offsets = [16, 0], sizes = [16, 32], strides = [1, 1]} : vector<64x32xf32> to vector<16x32xf32>
    %243 = arith.addf %241, %242 : vector<16x32xf32>
    %244 = vector.extract_strided_slice %240 {offsets = [32, 0], sizes = [16, 32], strides = [1, 1]} : vector<64x32xf32> to vector<16x32xf32>
    %245 = arith.addf %243, %244 : vector<16x32xf32>
    %246 = vector.extract_strided_slice %240 {offsets = [48, 0], sizes = [16, 32], strides = [1, 1]} : vector<64x32xf32> to vector<16x32xf32>
    %247 = arith.addf %245, %246 : vector<16x32xf32>
    %c1_88 = arith.constant 1 : index
    %c0_89 = arith.constant 0 : index
    %c0_90 = arith.constant 0 : index
    %248 = vector.load %arg4[%c1_88, %c0_89, %c0_90] : memref<2x160x32xf32, #tpu.memory_space<vmem>>, vector<1x32x32xf32>
    %249 = vector.shape_cast %248 : vector<1x32x32xf32> to vector<32x32xf32>
    %cst_91 = arith.constant dense<0.000000e+00> : vector<16x32xf32>
    %250 = tpu.matmul %247, %249, %cst_91 {dimension_numbers = #tpu.dot_dimension_numbers<[1], [0], [0], [1], [0, 0, 1, 1], [], []>} : vector<16x32xf32>, vector<32x32xf32>, vector<16x32xf32> -> vector<16x32xf32>
    %251 = vector.broadcast %209 : vector<1x32xf32> to vector<16x32xf32>
    %252 = arith.addf %250, %251 : vector<16x32xf32>
    %253 = arith.addf %207, %252 : vector<16x32xf32>
    %cst_92 = arith.constant dense<0.000000e+00> : vector<16xf32>
    %254 = vector.multi_reduction <add>, %253, %cst_92 [1] : vector<16x32xf32> to vector<16xf32>
    %255 = vector.shape_cast %254 : vector<16xf32> to vector<16x1xf32>
    %cst_93 = arith.constant 3.200000e+01 : f32
    %256 = vector.broadcast %cst_93 : f32 to vector<16x1xf32>
    %257 = arith.divf %255, %256 : vector<16x1xf32>
    %258 = vector.broadcast %257 : vector<16x1xf32> to vector<16x32xf32>
    %259 = arith.subf %253, %258 : vector<16x32xf32>
    %260 = arith.mulf %259, %259 : vector<16x32xf32>
    %cst_94 = arith.constant dense<0.000000e+00> : vector<16xf32>
    %261 = vector.multi_reduction <add>, %260, %cst_94 [1] : vector<16x32xf32> to vector<16xf32>
    %262 = vector.shape_cast %261 : vector<16xf32> to vector<16x1xf32>
    %cst_95 = arith.constant 3.200000e+01 : f32
    %263 = vector.broadcast %cst_95 : f32 to vector<16x1xf32>
    %264 = arith.divf %262, %263 : vector<16x1xf32>
    %265 = vector.broadcast %257 : vector<16x1xf32> to vector<16x32xf32>
    %266 = arith.subf %253, %265 : vector<16x32xf32>
    %cst_96 = arith.constant 9.99999974E-6 : f32
    %267 = vector.broadcast %cst_96 : f32 to vector<16x1xf32>
    %268 = arith.addf %264, %267 : vector<16x1xf32>
    %269 = math.rsqrt %268 : vector<16x1xf32>
    %270 = vector.broadcast %269 : vector<16x1xf32> to vector<16x32xf32>
    %271 = arith.mulf %266, %270 : vector<16x32xf32>
    %272 = vector.broadcast %212 : vector<1x32xf32> to vector<16x32xf32>
    %273 = arith.mulf %271, %272 : vector<16x32xf32>
    %274 = vector.broadcast %213 : vector<1x32xf32> to vector<16x32xf32>
    %275 = arith.addf %273, %274 : vector<16x32xf32>
    %c1_97 = arith.constant 1 : index
    %c0_98 = arith.constant 0 : index
    %c128_99 = arith.constant 128 : index
    %276 = vector.load %arg3[%c1_97, %c0_98, %c128_99] : memref<2x32x256xf32, #tpu.memory_space<vmem>>, vector<1x32x128xf32>
    %277 = vector.shape_cast %276 : vector<1x32x128xf32> to vector<32x128xf32>
    %cst_100 = arith.constant dense<0.000000e+00> : vector<16x128xf32>
    %278 = tpu.matmul %275, %277, %cst_100 {dimension_numbers = #tpu.dot_dimension_numbers<[1], [0], [0], [1], [0, 0, 1, 1], [], []>} : vector<16x32xf32>, vector<32x128xf32>, vector<16x128xf32> -> vector<16x128xf32>
    %279 = vector.broadcast %210 : vector<1x128xf32> to vector<16x128xf32>
    %280 = arith.addf %278, %279 : vector<16x128xf32>
    %cst_101 = arith.constant 5.000000e-01 : f32
    %281 = vector.broadcast %cst_101 : f32 to vector<16x128xf32>
    %282 = arith.mulf %281, %280 : vector<16x128xf32>
    %cst_102 = arith.constant 0.707106769 : f32
    %283 = vector.broadcast %cst_102 : f32 to vector<16x128xf32>
    %284 = arith.mulf %280, %283 : vector<16x128xf32>
    %285 = math.absf %284 : vector<16x128xf32>
    %cst_103 = arith.constant 0.327591091 : f32
    %286 = vector.broadcast %cst_103 : f32 to vector<16x128xf32>
    %287 = arith.mulf %286, %285 : vector<16x128xf32>
    %cst_104 = arith.constant 1.000000e+00 : f32
    %288 = vector.broadcast %cst_104 : f32 to vector<16x128xf32>
    %289 = arith.addf %288, %287 : vector<16x128xf32>
    %cst_105 = arith.constant 1.000000e+00 : f32
    %290 = vector.broadcast %cst_105 : f32 to vector<16x128xf32>
    %291 = arith.divf %290, %289 : vector<16x128xf32>
    %cst_106 = arith.constant 1.06140542 : f32
    %292 = vector.broadcast %cst_106 : f32 to vector<16x128xf32>
    %293 = arith.mulf %292, %291 : vector<16x128xf32>
    %cst_107 = arith.constant -1.45315206 : f32
    %294 = vector.broadcast %cst_107 : f32 to vector<16x128xf32>
    %295 = arith.addf %293, %294 : vector<16x128xf32>
    %296 = arith.mulf %295, %291 : vector<16x128xf32>
    %cst_108 = arith.constant 1.42141378 : f32
    %297 = vector.broadcast %cst_108 : f32 to vector<16x128xf32>
    %298 = arith.addf %296, %297 : vector<16x128xf32>
    %299 = arith.mulf %298, %291 : vector<16x128xf32>
    %cst_109 = arith.constant -0.284496725 : f32
    %300 = vector.broadcast %cst_109 : f32 to vector<16x128xf32>
    %301 = arith.addf %299, %300 : vector<16x128xf32>
    %302 = arith.mulf %301, %291 : vector<16x128xf32>
    %cst_110 = arith.constant 0.254829586 : f32
    %303 = vector.broadcast %cst_110 : f32 to vector<16x128xf32>
    %304 = arith.addf %302, %303 : vector<16x128xf32>
    %305 = arith.mulf %304, %291 : vector<16x128xf32>
    %cst_111 = arith.constant 0.000000e+00 : f32
    %306 = vector.broadcast %cst_111 : f32 to vector<16x128xf32>
    %307 = arith.subf %306, %285 : vector<16x128xf32>
    %308 = arith.mulf %307, %285 : vector<16x128xf32>
    %309 = math.exp %308 : vector<16x128xf32>
    %310 = arith.mulf %305, %309 : vector<16x128xf32>
    %cst_112 = arith.constant 1.000000e+00 : f32
    %311 = vector.broadcast %cst_112 : f32 to vector<16x128xf32>
    %312 = arith.subf %311, %310 : vector<16x128xf32>
    %cst_113 = arith.constant 0.000000e+00 : f32
    %313 = vector.broadcast %cst_113 : f32 to vector<16x128xf32>
    %314 = arith.cmpf oge, %284, %313 : vector<16x128xf32>
    %cst_114 = arith.constant 0.000000e+00 : f32
    %315 = vector.broadcast %cst_114 : f32 to vector<16x128xf32>
    %316 = arith.subf %315, %312 : vector<16x128xf32>
    %317 = arith.select %314, %312, %316 : vector<16x128xi1>, vector<16x128xf32>
    %cst_115 = arith.constant 1.000000e+00 : f32
    %318 = vector.broadcast %cst_115 : f32 to vector<16x128xf32>
    %319 = arith.addf %318, %317 : vector<16x128xf32>
    %320 = arith.mulf %282, %319 : vector<16x128xf32>
    %c1_116 = arith.constant 1 : index
    %c32_117 = arith.constant 32 : index
    %c0_118 = arith.constant 0 : index
    %321 = vector.load %arg4[%c1_116, %c32_117, %c0_118] : memref<2x160x32xf32, #tpu.memory_space<vmem>>, vector<1x128x32xf32>
    %322 = vector.shape_cast %321 : vector<1x128x32xf32> to vector<128x32xf32>
    %cst_119 = arith.constant dense<0.000000e+00> : vector<16x32xf32>
    %323 = tpu.matmul %320, %322, %cst_119 {dimension_numbers = #tpu.dot_dimension_numbers<[1], [0], [0], [1], [0, 0, 1, 1], [], []>} : vector<16x128xf32>, vector<128x32xf32>, vector<16x32xf32> -> vector<16x32xf32>
    %324 = vector.broadcast %211 : vector<1x32xf32> to vector<16x32xf32>
    %325 = arith.addf %323, %324 : vector<16x32xf32>
    %326 = arith.addf %275, %325 : vector<16x32xf32>
    %cst_120 = arith.constant dense<0.000000e+00> : vector<16xf32>
    %327 = vector.multi_reduction <add>, %326, %cst_120 [1] : vector<16x32xf32> to vector<16xf32>
    %328 = vector.shape_cast %327 : vector<16xf32> to vector<16x1xf32>
    %cst_121 = arith.constant 3.200000e+01 : f32
    %329 = vector.broadcast %cst_121 : f32 to vector<16x1xf32>
    %330 = arith.divf %328, %329 : vector<16x1xf32>
    %331 = vector.broadcast %330 : vector<16x1xf32> to vector<16x32xf32>
    %332 = arith.subf %326, %331 : vector<16x32xf32>
    %333 = arith.mulf %332, %332 : vector<16x32xf32>
    %cst_122 = arith.constant dense<0.000000e+00> : vector<16xf32>
    %334 = vector.multi_reduction <add>, %333, %cst_122 [1] : vector<16x32xf32> to vector<16xf32>
    %335 = vector.shape_cast %334 : vector<16xf32> to vector<16x1xf32>
    %cst_123 = arith.constant 3.200000e+01 : f32
    %336 = vector.broadcast %cst_123 : f32 to vector<16x1xf32>
    %337 = arith.divf %335, %336 : vector<16x1xf32>
    %338 = vector.broadcast %330 : vector<16x1xf32> to vector<16x32xf32>
    %339 = arith.subf %326, %338 : vector<16x32xf32>
    %cst_124 = arith.constant 9.99999974E-6 : f32
    %340 = vector.broadcast %cst_124 : f32 to vector<16x1xf32>
    %341 = arith.addf %337, %340 : vector<16x1xf32>
    %342 = math.rsqrt %341 : vector<16x1xf32>
    %343 = vector.broadcast %342 : vector<16x1xf32> to vector<16x32xf32>
    %344 = arith.mulf %339, %343 : vector<16x32xf32>
    %345 = vector.broadcast %214 : vector<1x32xf32> to vector<16x32xf32>
    %346 = arith.mulf %344, %345 : vector<16x32xf32>
    %347 = vector.broadcast %215 : vector<1x32xf32> to vector<16x32xf32>
    %348 = arith.addf %346, %347 : vector<16x32xf32>
    %cst_125 = arith.constant dense<0.000000e+00> : vector<2x32xf32>
    %349 = tpu.matmul %36, %348, %cst_125 {dimension_numbers = #tpu.dot_dimension_numbers<[1], [0], [0], [1], [0, 0, 1, 1], [], []>} : vector<2x16xf32>, vector<16x32xf32>, vector<2x32xf32> -> vector<2x32xf32>
    %c24 = arith.constant 24 : index
    %c0_126 = arith.constant 0 : index
    %350 = vector.load %arg5[%c24, %c0_126] : memref<56x128xf32, #tpu.memory_space<vmem>>, vector<32x32xf32>
    %cst_127 = arith.constant dense<0.000000e+00> : vector<2x32xf32>
    %351 = tpu.matmul %349, %350, %cst_127 {dimension_numbers = #tpu.dot_dimension_numbers<[1], [0], [0], [1], [0, 0, 1, 1], [], []>} : vector<2x32xf32>, vector<32x32xf32>, vector<2x32xf32> -> vector<2x32xf32>
    %352 = tpu.concatenate %348, %351 in 0 : vector<16x32xf32>, vector<2x32xf32> -> vector<18x32xf32>
    %c0_128 = arith.constant 0 : index
    %c0_129 = arith.constant 0 : index
    %353 = vector.load %arg6[%c0_128, %c0_129] : memref<18x32xf32, #tpu.memory_space<vmem>>, vector<18x32xf32>
    tpu.vector_store %arg6[%c0_128, %c0_129], %352 {strides = array<i32>} : memref<18x32xf32, #tpu.memory_space<vmem>>, vector<18x32xf32>,
    return
  }
}

</mosaic_0001>

<bundles_post_ra>
// kernel: mul.17
= control target key start
LH: loop header
LB: loop body
LE: loop exit
PB: predicated region body
PF: predicated region fallthrough
CT: control target
= control target key end

     0   :  { %vm7_vm0 = vcmask 64512   ;;  %vm13_vm1 = vcmask 130112   ;;  %s39_s0 = inlined_call_operand.vmem [shape: f32[2,8], index: 0, kind: input, shape index: {}]   ;;  %s40_s1 = inlined_call_operand.vmem [shape: f32[16], index: 1, kind: output, shape index: {}]  }
   0x1   :  { %v4_v0 = vld [vmem:[%s39_s0] sm:$0x3]  ;;  %s22_s0 = smov 8  }
   0x2   :  { %5 = vst [vmem:[#allocation1] sm:$0x3] %v4_v0 }
   0x9   :  { %v10_v1 = vld [vmem:[#allocation1 + $0x1] sm:$0x1]   ;;  %v6_v2 = vld [vmem:[#allocation1] sm:$0x1]  }
   0xa   :  { %11 = vrot.lane.b32.xlu0 %v10_v1, %s22_s0  ;;  %8 = vst.msk [vmem:[#allocation0] sm:$0x1] %vm7_vm0, %v6_v2  }
  0x7c   :  { %v12_v3 = vpop.permute.xlu0 %11  }
  0x7d   :  { %14 = vst.msk [vmem:[#allocation0] sm:$0x1] %vm13_vm1, %v12_v3  }
  0x84   :  { %v18_v4 = vld [vmem:[#allocation0] sm:$0x1] }
  0x85   :  { %20 = vst [vmem:[%s40_s1] sm:$0x1] %v18_v4 }

// kernel: tile.9
= control target key start
LH: loop header
LB: loop body
LE: loop exit
PB: predicated region body
PF: predicated region fallthrough
CT: control target
= control target key end

     0   :  { %vm82_vm0 = vcmask 1047556   ;;  %vm84_vm1 = vcmask 130048   ;;  %s195_s9 = smov 48   ;;  %s196_s14 = smov 16   ;;  %vm103_vm2 = vcmask 523648   ;;  %vm124_vm3 = vcmask 392448   ;;  %s289_s0 = inlined_call_operand.vmem [shape: f32[4,16,16], index: 0, kind: input, shape index: {}]   ;;  %s290_s1 = inlined_call_operand.vmem [shape: f32[64,16], index: 1, kind: output, shape index: {}]  }
   0x1   :  { %v180_v0 = vld [vmem:[%s289_s0 + $0x1c] sm:$0xf]  ;;  %v181_v1 = vld [vmem:[%s289_s0 + $0x18] sm:$0xf]  ;;  %v182_v2 = vld [vmem:[%s289_s0 + $0x14] sm:$0xf] }
   0x2   :  { %48 = vst [vmem:[#allocation0 + $0x38] sm:$0xf] %v180_v0  ;;  %53 = vst [vmem:[#allocation0 + $0x30] sm:$0xf] %v181_v1  ;;  %v183_v3 = vld [vmem:[%s289_s0 + $0x10] sm:$0xf] }
   0x3   :  { %58 = vst [vmem:[#allocation0 + $0x28] sm:$0xf] %v182_v2  ;;  %v184_v4 = vld [vmem:[%s289_s0 + $0xc] sm:$0xf]  ;;  %v185_v5 = vld [vmem:[%s289_s0 + $0x8] sm:$0xf] }
   0x4   :  { %63 = vst [vmem:[#allocation0 + $0x20] sm:$0xf] %v183_v3  ;;  %68 = vst [vmem:[#allocation0 + $0x18] sm:$0xf] %v184_v4  ;;  %v186_v6 = vld [vmem:[%s289_s0 + $0x4] sm:$0xf] }
   0x5   :  { %73 = vst [vmem:[#allocation0 + $0x10] sm:$0xf] %v185_v5  ;;  %v78_v7 = vld [vmem:[%s289_s0] sm:$0xf]  ;;  %77 = vst [vmem:[#allocation0 + $0x8] sm:$0xf] %v186_v6 }
   0x6   :  { %79 = vst [vmem:[#allocation0] sm:$0xf] %v78_v7  ;;  %v172_v8 = vld [vmem:[%s289_s0 + $0x3c] sm:$0xf]  ;;  %v173_v9 = vld [vmem:[%s289_s0 + $0x38] sm:$0xf] }
   0x7   :  { %8 = vst [vmem:[#allocation0 + $0x78] sm:$0xf] %v172_v8  ;;  %13 = vst [vmem:[#allocation0 + $0x70] sm:$0xf] %v173_v9  ;;  %v174_v10 = vld [vmem:[%s289_s0 + $0x34] sm:$0xf] }
   0x8   :  { %v175_v11 = vld [vmem:[%s289_s0 + $0x30] sm:$0xf]  ;;  %v176_v12 = vld [vmem:[%s289_s0 + $0x2c] sm:$0xf]  ;;  %18 = vst [vmem:[#allocation0 + $0x68] sm:$0xf] %v174_v10 }
   0x9   :  { %23 = vst [vmem:[#allocation0 + $0x60] sm:$0xf] %v175_v11  ;;  %28 = vst [vmem:[#allocation0 + $0x58] sm:$0xf] %v176_v12  ;;  %v177_v13 = vld [vmem:[%s289_s0 + $0x28] sm:$0xf] }
   0xa   :  { %v178_v14 = vld [vmem:[%s289_s0 + $0x24] sm:$0xf]  ;;  %v179_v15 = vld [vmem:[%s289_s0 + $0x20] sm:$0xf]  ;;  %33 = vst [vmem:[#allocation0 + $0x50] sm:$0xf] %v177_v13 }
   0xb   :  { %38 = vst [vmem:[#allocation0 + $0x48] sm:$0xf] %v178_v14  ;;  %43 = vst [vmem:[#allocation0 + $0x40] sm:$0xf] %v179_v15  ;;  %s194_s0 = smov 32   ;;  %vm145_vm4 = vcmask 261248  }
   0xc   :  { %v119_v16 = vld [vmem:[#allocation0 + $0x2] ss:$8 sm:$0xf0]   ;;  %v98_v17 = vld [vmem:[#allocation0 + $0x3] ss:$8 sm:$0xf0]  }
   0xd   :  { %v117_v18 = vld [vmem:[#allocation0 + $0x2] ss:$8 sm:$0xf]   ;;  %v96_v19 = vld [vmem:[#allocation0 + $0x3] ss:$8 sm:$0xf]  }
   0xe   :  { %v121_v20 = vsel %vm82_vm0, %v119_v16, %v117_v18  ;;  %v100_v21 = vsel %vm82_vm0, %v98_v17, %v96_v19  ;;  %v138_v24 = vld [vmem:[#allocation0 + $0x1] ss:$8 sm:$0xf]   ;;  %v80_v32 = vld [vmem:[#allocation0] ss:$8 sm:$0xf]  }
   0xf   :  { %122 = vrot.lane.b32.xlu1 %v121_v20, %s194_s0  ;;  %101 = vrot.lane.b32.xlu0 %v100_v21, %s195_s9  ;;  %v140_v25 = vld [vmem:[#allocation0 + $0x1] ss:$8 sm:$0xf0]   ;;  %v81_v33 = vld [vmem:[#allocation0] ss:$8 sm:$0xf0]  }
  0x10   :  { %v129_v22 = vld [vmem:[#allocation0 + $0x42] ss:$8 sm:$0xf0]   ;;  %v108_v23 = vld [vmem:[#allocation0 + $0x43] ss:$8 sm:$0xf0]   ;;  %v83_v34 = vsel %vm82_vm0, %v81_v33, %v80_v32  ;;  %v142_v38 = vsel %vm82_vm0, %v140_v25, %v138_v24 }
  0x11   :  { %v150_v31 = vld [vmem:[#allocation0 + $0x41] ss:$8 sm:$0xf0]   ;;  %v89_v36 = vld [vmem:[#allocation0 + $0x40] ss:$8 sm:$0xf0]  }
  0x12   :  { %v127_v26 = vld [vmem:[#allocation0 + $0x42] ss:$8 sm:$0xf]   ;;  %v106_v27 = vld [vmem:[#allocation0 + $0x43] ss:$8 sm:$0xf]  }
  0x13   :  { %v131_v28 = vsel %vm82_vm0, %v129_v22, %v127_v26  ;;  %v110_v29 = vsel %vm82_vm0, %v108_v23, %v106_v27  ;;  %v148_v30 = vld [vmem:[#allocation0 + $0x41] ss:$8 sm:$0xf]   ;;  %v87_v35 = vld [vmem:[#allocation0 + $0x40] ss:$8 sm:$0xf]  }
  0x14   :  { %132 = vrot.lane.b32.xlu1 %v131_v28, %s194_s0  ;;  %111 = vrot.lane.b32.xlu0 %v110_v29, %s195_s9  ;;  %v152_v37 = vsel %vm82_vm0, %v150_v31, %v148_v30  ;;  %85 = vst.msk [vmem:[%s290_s1] sm:$0xff] %vm84_vm1, %v83_v34   ;;  %v91_v39 = vsel %vm82_vm0, %v89_v36, %v87_v35 }
  0x15   :  { %187 = vst.msk [vmem:[%s290_s1 + $0x8] sm:$0xff] %vm84_vm1, %v91_v39  }
  0x18   :  { %153 = vrot.lane.b32.xlu1 %v152_v37, %s196_s14  ;;  %143 = vrot.lane.b32.xlu0 %v142_v38, %s196_s14 }
  0x81   :  { %v123_v40 = vpop.permute.xlu1 %122   ;;  %v102_v41 = vpop.permute.xlu0 %101  }
  0x82   :  { %104 = vst.msk [vmem:[%s290_s1] sm:$0xff] %vm103_vm2, %v102_v41  }
  0x83   :  { %125 = vst.msk [vmem:[%s290_s1] sm:$0xff] %vm124_vm3, %v123_v40  }
  0x86   :  { %v133_v42 = vpop.permute.xlu1 %132   ;;  %v112_v43 = vpop.permute.xlu0 %111  }
  0x87   :  { %188 = vst.msk [vmem:[%s290_s1 + $0x8] sm:$0xff] %vm103_vm2, %v112_v43  }
  0x88   :  { %189 = vst.msk [vmem:[%s290_s1 + $0x8] sm:$0xff] %vm124_vm3, %v133_v42  }
  0x8a   :  { %v154_v44 = vpop.permute.xlu1 %153   ;;  %v144_v45 = vpop.permute.xlu0 %143  }
  0x8b   :  { %190 = vst.msk [vmem:[%s290_s1 + $0x8] sm:$0xff] %vm145_vm4, %v154_v44   ;;  %146 = vst.msk [vmem:[%s290_s1] sm:$0xff] %vm145_vm4, %v144_v45  }

// kernel: cml_text_encoder_ane.1
= control target key start
LH: loop header
LB: loop body
LE: loop exit
PB: predicated region body
PF: predicated region fallthrough
CT: control target
= control target key end

     0   :  { %v2897_v0 = vmov 0   ;;  %v25_v15 = vlaneseq  ;;  %vm48_vm0 = vcmask 523264   ;;  %v2898_v18 = vmov 0.0   ;;  %s2899_s7 = smov 96   ;;  %s2900_s22 = smov 64   ;;  %s3504_s0 = inlined_call_operand.vmem [shape: s32[16,1], index: 0, kind: input, shape index: {}]   ;;  %s3505_s2 = inlined_call_operand.vmem [shape: f32[72,32], index: 2, kind: input, shape index: {}]   ;;  %s3506_s3 = inlined_call_operand.vmem [shape: f32[2,32,256], index: 3, kind: input, shape index: {}]   ;;  %s3507_s5 = inlined_call_operand.vmem [shape: f32[56,128], index: 5, kind: input, shape index: {}]   ;;  %s3508_s1 = inlined_call_operand.vmem [shape: f32[66,16], index: 1, kind: input, shape index: {}]   ;;  %s3509_s4 = inlined_call_operand.vmem [shape: f32[2,160,32], index: 4, kind: input, shape index: {}]   ;;  %s3510_s6 = inlined_call_operand.vmem [shape: f32[18,32], index: 6, kind: output, shape index: {}]  }
   0x1   :  { %2776 = vset.pattern.permute.xlu0 %v2897_v0  ;;  %v23_v1 = vld [vmem:[%s3504_s0] sm:$0xff]  ;;  %v40_v3 = vld [vmem:[%s3505_s2 + $0x8] sm:$0xff]  ;;  %v41_v4 = vld [vmem:[%s3505_s2 + $0x10] sm:$0xff]  ;;  %vm132_vm3 = vcmask 261120   ;;  %vm447_vm15 = vcmask 130048  }
   0x2   :  { %v39_v2 = vld [vmem:[%s3505_s2] sm:$0xff]  ;;  %28 = vperm.xlu0 %2776, %v23_v1   ;;  %v42_v5 = vld [vmem:[%s3505_s2 + $0x18] sm:$0xff]  ;;  %v24_v6 = vld [vmem:[%s3504_s0 + $0x8] sm:$0xff]  ;;  %v2968_v16 = vand.u32 127, %v25_v15 }
   0x3   :  { %v2613_v7 = vpack.c.bf16 %v40_v3, %v39_v2  ;;  %v2617_v8 = vpack.c.bf16 %v42_v5, %v41_v4  ;;  %v43_v9 = vld [vmem:[%s3505_s2 + $0x20] sm:$0xff]  ;;  %v44_v10 = vld [vmem:[%s3505_s2 + $0x28] sm:$0xff]  ;;  %v45_v12 = vld [vmem:[%s3505_s2 + $0x30] sm:$0xff] }
   0x4   :  { %v2621_v11 = vpack.c.bf16 %v44_v10, %v43_v9  ;;  %v46_v13 = vld [vmem:[%s3505_s2 + $0x38] sm:$0xff]  ;;  %v47_v22 = vld [vmem:[%s3505_s2 + $0x40] sm:$0xff]  ;;  %v210_v40 = vld [vmem:[%s3506_s3 + $0x10] sm:$0xff]  ;;  %vm182_vm4 = vcmp.lt.s32.totalorder %v2968_v16, 8  ;;  %vm186_vm6 = vcmp.ge.s32.totalorder %v2968_v16, 8  ;;  %vm187_vm7 = vcmp.lt.s32.totalorder %v2968_v16, 16 }
   0x5   :  { %2614 = vmatprep.subr.bf16.mxu0 %v2613_v7  ;;  %v2625_v14 = vpack.c.bf16 %v46_v13, %v45_v12  ;;  %v209_v39 = vld [vmem:[%s3506_s3] sm:$0xff]  ;;  %v212_v43 = vld [vmem:[%s3506_s3 + $0x30] sm:$0xff]  ;;  %v2152_v61 = vld [vmem:[%s3507_s5 + $0x8] ss:$0 sm:$0xff]  ;;  %v3012_v2 = vsel %vm182_vm4, 1.0, %v2898_v18  ;;  %vm191_vm9 = vcmp.ge.s32.totalorder %v2968_v16, 16 }
   0x6   :  { %31 = vperm.xlu0 %2776, %v24_v6   ;;  %2616 = vmatpush3.bf16.msra.mxu0 %v2613_v7  ;;  %v211_v41 = vld [vmem:[%s3506_s3 + $0x20] sm:$0xff]  ;;  %v2629_v42 = vpack.c.bf16 %v210_v40, %v209_v39  ;;  %vm3022_vm5 = vmpackc.low %vm132_vm3, %vm132_vm3  ;;  %vm192_vm10 = vcmp.lt.s32.totalorder %v2968_v16, 24  ;;  %vm196_vm12 = vcmp.ge.s32.totalorder %v2968_v16, 24  ;;  %vm197_vm13 = vcmp.lt.s32.totalorder %v2968_v16, 32 }
   0x7   :  { %2618 = vmatprep.subr.bf16.mxu0 %v2617_v8  ;;  %v2633_v44 = vpack.c.bf16 %v212_v43, %v211_v41  ;;  %v2146_v52 = vld [vmem:[%s3507_s5] ss:$0 sm:$0xff]  ;;  %v2147_v54 = vld [vmem:[%s3507_s5 + $0x1] ss:$0 sm:$0xff]  ;;  %vm188_vm8 = vmand %vm186_vm6, %vm187_vm7  ;;  %vm2136_vm6 = vcmask 254976  }
   0x8   :  { %2630 = vmatprep.subr.bf16.mxu1 %v2629_v42  ;;  %v3035_v12 = vsel %vm188_vm8, 1.0, %v2898_v18  ;;  %vm193_vm11 = vmand %vm191_vm9, %vm192_vm10  ;;  %v3096_v43 = vld [vmem:[%s3508_s1 + $0x20] sm:$0xff] }
   0x9   :  { %2632 = vmatpush3.bf16.msra.mxu1 %v2629_v42  ;;  %v3043_v15 = vsel %vm193_vm11, 1.0, %v2898_v18  ;;  %vm198_vm14 = vmand %vm196_vm12, %vm197_vm13 }
   0xa   :  { %2620 = vmatpush3.bf16.msra.mxu0 %v2617_v8  ;;  %2634 = vmatprep.subr.bf16.mxu1 %v2633_v44 }
   0xb   :  { %2622 = vmatprep.subr.bf16.mxu0 %v2621_v11 }
   0xd   :  { %2636 = vmatpush3.bf16.msra.mxu1 %v2633_v44 }
   0xe   :  { %2624 = vmatpush3.bf16.msra.mxu0 %v2621_v11 }
   0xf   :  { %2626 = vmatprep.subr.bf16.mxu0 %v2625_v14 }
  0x12   :  { %2628 = vmatpush3.bf16.msra.mxu0 %v2625_v14 }
  0x81   :  { %v29_v17 = vpop.permute.xlu0 %28 }
  0x82   :  { %vm33_vm1 = vcmp.eq.s32.totalorder %v29_v17, %v2968_v16 }
  0x83   :  { %v2142_v19 = vsel %vm33_vm1, 1.0, %v2898_v18 }
  0x84   :  { %2392 = vmatprep.mubr.msk.f32.mxu0 %vm48_vm0, %v2142_v19 }
  0x85   :  { %v32_v20 = vpop.permute.xlu0 %31 }
  0x86   :  { %vm34_vm2 = vcmp.eq.s32.totalorder %v32_v20, %v2968_v16  ;;  %v3050_v20 = vsel %vm198_vm14, 1.0, %v2898_v18 }
  0x87   :  { %v2143_v21 = vsel %vm34_vm2, 1.0, %v2898_v18 }
  0x88   :  { %2393 = vmatmul.mubr.msk.f32.vlgmr.msra.gmra.mrb[0].mxu0 %vm48_vm0, %v2143_v21 }
 0x15b   :  { %v2394_v23 = vpop.f32.mrb[0].mxu0 }
 0x15c   :  { %v121_v24 = vpop.f32.mrb[1].mxu0  ;;  %v127_v26 = vadd.f32 %v2394_v23, %v47_v22  ;;  %v3062_v23 = vld [vmem:[%s3508_s1 + $0x8] sm:$0xff] }
 0x15d   :  { %v122_v25 = vadd.f32 %v121_v24, %v47_v22  ;;  %v3067_v24 = vld [vmem:[%s3508_s1] sm:$0xff] }
 0x15e   :  { %v136_v28 = vsel %vm132_vm3, %v127_v26, 0.0 }
 0x15f   :  { %v133_v27 = vsel %vm132_vm3, %v122_v25, 0.0 }
 0x160   :  { %134 = vadd.xlane.f32.xlu1 %v133_v27 }
 0x164   :  { %137 = vadd.xlane.f32.xlu1 %v136_v28 }
 0x1ed   :  { %v135_v29 = vpop.xlane.xlu1 %134 }
 0x1ee   :  { %v140_v30 = vmul.f32 0.03125, %v135_v29  ;;  %v3074_v29 = vld [vmem:[%s3508_s1 + $0x18] sm:$0xff] }
 0x1f0   :  { %v142_v31 = vsub.f32 %v122_v25, %v140_v30 }
 0x1f1   :  { %v138_v32 = vpop.xlane.xlu1 %137 }
 0x1f2   :  { %v141_v33 = vmul.f32 0.03125, %v138_v32  ;;  %v144_v34 = vmul.f32 %v142_v31, %v142_v31  ;;  %v3080_v32 = vld [vmem:[%s3508_s1 + $0x10] sm:$0xff] }
 0x1f4   :  { %v143_v35 = vsub.f32 %v127_v26, %v141_v33  ;;  %v146_v36 = vsel %vm132_vm3, %v144_v34, 0.0 }
 0x1f5   :  { %147 = vadd.xlane.f32.xlu0 %v146_v36 }
 0x1f6   :  { %v145_v37 = vmul.f32 %v143_v35, %v143_v35 }
 0x1f8   :  { %v149_v38 = vsel %vm132_vm3, %v145_v37, 0.0 }
 0x1f9   :  { %150 = vadd.xlane.f32.xlu1 %v149_v38  ;;  %v3089_v38 = vld [vmem:[%s3508_s1 + $0x28] sm:$0xff] }
 0x282   :  { %v148_v45 = vpop.xlane.xlu0 %147 }
 0x283   :  { %v152_v46 = vmul.f32 0.03125, %v148_v45 }
 0x285   :  { %v154_v47 = vadd.f32 1e-05, %v152_v46 }
 0x286   :  { %v151_v48 = vpop.xlane.xlu1 %150 }
 0x287   :  { %2797 = vrsqrt.f32 %v154_v47  ;;  %v153_v49 = vmul.f32 0.03125, %v151_v48  ;;  %v3103_v48 = vld [vmem:[%s3508_s1 + $0x30] sm:$0xff] }
 0x289   :  { %v155_v50 = vadd.f32 1e-05, %v153_v49 }
 0x28b   :  { %2799 = vrsqrt.f32 %v155_v50 }
 0x291   :  { %v2798_v51 = vpop.eup %2797 }
 0x292   :  { %v158_v53 = vmul.f32 %v2798_v51, %v142_v31  ;;  %v3110_v51 = vld [vmem:[%s3508_s1 + $0x38] sm:$0xff] }
 0x294   :  { %v164_v55 = vmul.f32 %v2146_v52, %v158_v53 }
 0x295   :  { %v2800_v56 = vpop.eup %2799 }
 0x296   :  { %v159_v57 = vmul.f32 %v2800_v56, %v143_v35  ;;  %v2999_v58 = vadd.f32 %v2147_v54, %v164_v55 }
 0x298   :  { %v165_v59 = vmul.f32 %v2146_v52, %v159_v57  ;;  %2403 = vmatprep.mubr.msk.f32.mxu1 %vm132_vm3, %v2999_v58 }
 0x29a   :  { %v3003_v60 = vadd.f32 %v2147_v54, %v165_v59 }
 0x29c   :  { %2404 = vmatmul.mubr.msk.f32.vlgmr.msra.gmra.mrb[0].mxu1 %vm132_vm3, %v3003_v60 }
 0x36f   :  { %v2405_v62 = vpop.f32.mrb[0].mxu1 }
 0x370   :  { %v295_v63 = vadd.f32 %v2405_v62, %v2152_v61  ;;  %v289_v0 = vpop.f32.mrb[1].mxu1 }
 0x371   :  { %v290_v1 = vadd.f32 %v2152_v61, %v289_v0 }
 0x372   :  { %v299_v11 = vmul.f32 0.35355338, %v295_v63 }
 0x373   :  { %v298_v3 = vmul.f32 0.35355338, %v290_v1  ;;  %v3014_v4 = vpack.i.bf16 %v295_v63, %v290_v1 }
 0x374   :  { %v301_v13 = vmul.f32 %v3012_v2, %v299_v11  ;;  %v303_v17 = vmul.f32 %v3035_v12, %v299_v11  ;;  %v305_v16 = vmul.f32 %v3043_v15, %v299_v11  ;;  %v307_v22 = vmul.f32 %v3050_v20, %v299_v11 }
 0x375   :  { %2778 = vrot.lane.b32.xlu1 %v3014_v4, %s2899_s7  ;;  %v300_v5 = vmul.f32 %v3012_v2, %v298_v3  ;;  %v302_v14 = vmul.f32 %v3035_v12, %v298_v3  ;;  %v304_v19 = vmul.f32 %v3043_v15, %v298_v3  ;;  %v306_v21 = vmul.f32 %v3050_v20, %v298_v3 }
 0x377   :  { %2410 = vmatprep.mubr.msk.f32.mxu1 %vm132_vm3, %v300_v5 }
 0x3e7   :  { %v2779_v6 = vpop.permute.xlu1 %2778 }
 0x3e8   :  { %v2781_v7 = vunpack.i.h.bf16 %v2779_v6  ;;  %v2780_v8 = vunpack.i.l.bf16 %v2779_v6 }
 0x3ea   :  { %v2637_v10 = vpack.c.bf16 %v2781_v7, %v2780_v8 }
 0x3ec   :  { %2639 = vmatprep.subr.msk.bf16.mxu1 %vm3022_vm5, %v2637_v10 }
 0x3ed   :  { %2642 = vmatpush3.bf16.xpose.msk.msra.mxu1 %vm3022_vm5, %v2637_v10 }
 0x3f4   :  { %2411 = vmatmul.mubr.msk.f32.vlgmr.msra.gmra.mrb[2].mxu1 %vm132_vm3, %v301_v13 }
 0x3f5   :  { %2413 = vmatprep.mubr.msk.f32.mxu1 %vm132_vm3, %v302_v14 }
 0x3f8   :  { %2414 = vmatmul.mubr.msk.f32.gmra.mrb[4].mxu1 %vm132_vm3, %v303_v17 }
 0x3f9   :  { %2416 = vmatprep.mubr.msk.f32.mxu1 %vm132_vm3, %v304_v19 }
 0x3fc   :  { %2417 = vmatmul.mubr.msk.f32.gmra.mrb[6].mxu1 %vm132_vm3, %v305_v16 }
 0x3fd   :  { %2419 = vmatprep.mubr.msk.f32.mxu1 %vm132_vm3, %v306_v21 }
 0x400   :  { %2420 = vmatmul.mubr.msk.f32.gmra.mrb[8].mxu1 %vm132_vm3, %v307_v22 }
 0x4c7   :  { %v2412_v25 = vpop.f32.mrb[2].mxu1 }
 0x4c8   :  { %v414_v26 = vadd.f32 %v2412_v25, %v3062_v23  ;;  %v408_v27 = vpop.f32.mrb[3].mxu1 }
 0x4c9   :  { %v409_v28 = vadd.f32 %v408_v27, %v3067_v24 }
 0x4ca   :  { %v451_v30 = vsel %vm447_vm15, %v414_v26, -inf }
 0x4cb   :  { %452 = vmax.xlane.f32.xlu0 %v451_v30  ;;  %v2415_v31 = vpop.f32.mrb[4].mxu1  ;;  %v448_v33 = vsel %vm447_vm15, %v409_v28, -inf }
 0x4cc   :  { %v424_v34 = vadd.f32 %v2415_v31, %v3074_v29  ;;  %v418_v35 = vpop.f32.mrb[5].mxu1  ;;  %449 = vmax.xlane.f32.xlu1 %v448_v33 }
 0x4cd   :  { %v419_v36 = vadd.f32 %v418_v35, %v3080_v32 }
 0x4ce   :  { %v457_v37 = vsel %vm447_vm15, %v424_v34, -inf }
 0x4cf   :  { %458 = vmax.xlane.f32.xlu0 %v457_v37  ;;  %v2418_v39 = vpop.f32.mrb[6].mxu1  ;;  %v454_v42 = vsel %vm447_vm15, %v419_v36, -inf }
 0x4d0   :  { %v428_v40 = vpop.f32.mrb[7].mxu1  ;;  %v434_v41 = vadd.f32 %v2418_v39, %v3089_v38 }
 0x4d1   :  { %v429_v46 = vadd.f32 %v428_v40, %v3096_v43 }
 0x4d2   :  { %v463_v47 = vsel %vm447_vm15, %v434_v41, -inf }
 0x4d3   :  { %v2421_v44 = vpop.f32.mrb[8].mxu1  ;;  %455 = vmax.xlane.f32.xlu0 %v454_v42  ;;  %v460_v50 = vsel %vm447_vm15, %v429_v46, -inf }
 0x4d4   :  { %v438_v45 = vpop.f32.mrb[9].mxu1  ;;  %v444_v52 = vadd.f32 %v2421_v44, %v3110_v51 }
 0x4d5   :  { %v439_v49 = vadd.f32 %v438_v45, %v3103_v48 }
 0x4d6   :  { %v469_v54 = vsel %vm447_vm15, %v444_v52, -inf }
 0x4d7   :  { %464 = vmax.xlane.f32.xlu0 %v463_v47  ;;  %v466_v53 = vsel %vm447_vm15, %v439_v49, -inf }
 0x4db   :  { %461 = vmax.xlane.f32.xlu0 %v460_v50 }
 0x4df   :  { %467 = vmax.xlane.f32.xlu0 %v466_v53 }
 0x4e3   :  { %470 = vmax.xlane.f32.xlu0 %v469_v54 }
 0x558   :  { %v453_v55 = vpop.xlane.xlu0 %452 }
 0x559   :  { %v473_v56 = vsub.f32 %v414_v26, %v453_v55  ;;  %v450_v57 = vpop.xlane.xlu1 %449 }
 0x55a   :  { %v472_v59 = vsub.f32 %v409_v28, %v450_v57 }
 0x55b   :  { %v482_v61 = vmul.f32 1.442695, %v473_v56 }
 0x55c   :  { %v480_v62 = vmul.f32 1.442695, %v472_v59  ;;  %v459_v63 = vpop.xlane.xlu0 %458 }
 0x55d   :  { %2801 = vpow2.f32 %v482_v61  ;;  %v475_v0 = vsub.f32 %v424_v34, %v459_v63 }
 0x55e   :  { %2803 = vpow2.f32 %v480_v62 }
 0x55f   :  { %v486_v1 = vmul.f32 1.442695, %v475_v0 }
 0x560   :  { %v456_v3 = vpop.xlane.xlu0 %455 }
 0x561   :  { %2805 = vpow2.f32 %v486_v1  ;;  %v474_v5 = vsub.f32 %v419_v36, %v456_v3 }
 0x563   :  { %v484_v6 = vmul.f32 1.442695, %v474_v5 }
 0x564   :  { %v465_v7 = vpop.xlane.xlu0 %464 }
 0x565   :  { %2807 = vpow2.f32 %v484_v6  ;;  %v477_v8 = vsub.f32 %v434_v41, %v465_v7 }
 0x567   :  { %v3115_v10 = vpop.eup %2801  ;;  %v490_v11 = vmul.f32 1.442695, %v477_v8 }
 0x568   :  { %v2804_v13 = vpop.eup %2803  ;;  %v462_v14 = vpop.xlane.xlu0 %461  ;;  %v499_v17 = vsel %vm447_vm15, %v3115_v10, 0.0 }
 0x569   :  { %2809 = vpow2.f32 %v490_v11  ;;  %v476_v19 = vsub.f32 %v429_v46, %v462_v14  ;;  %500 = vadd.xlane.f32.xlu0 %v499_v17  ;;  %v496_v16 = vsel %vm447_vm15, %v2804_v13, 0.0 }
 0x56a   :  { %497 = vadd.xlane.f32.xlu1 %v496_v16  ;;  %v685_v16 = vld [vmem:[%s3509_s4] sm:$0xff] }
 0x56b   :  { %v3120_v21 = vpop.eup %2805  ;;  %v488_v22 = vmul.f32 1.442695, %v476_v19 }
 0x56c   :  { %v468_v25 = vpop.xlane.xlu0 %467  ;;  %v505_v26 = vsel %vm447_vm15, %v3120_v21, 0.0 }
 0x56d   :  { %2811 = vpow2.f32 %v488_v22  ;;  %v478_v27 = vsub.f32 %v439_v49, %v468_v25  ;;  %506 = vadd.xlane.f32.xlu0 %v505_v26  ;;  %v687_v25 = vld [vmem:[%s3509_s4 + $0x10] sm:$0xff]  ;;  %v688_v26 = vld [vmem:[%s3509_s4 + $0x18] sm:$0xff] }
 0x56f   :  { %v2808_v28 = vpop.eup %2807  ;;  %v492_v30 = vmul.f32 1.442695, %v478_v27  ;;  %v2651_v27 = vpack.c.bf16 %v688_v26, %v687_v25 }
 0x570   :  { %v471_v31 = vpop.xlane.xlu0 %470  ;;  %v502_v33 = vsel %vm447_vm15, %v2808_v28, 0.0 }
 0x571   :  { %2813 = vpow2.f32 %v492_v30  ;;  %v479_v34 = vsub.f32 %v444_v52, %v471_v31  ;;  %503 = vadd.xlane.f32.xlu1 %v502_v33 }
 0x573   :  { %v2810_v35 = vpop.eup %2809  ;;  %v494_v36 = vmul.f32 1.442695, %v479_v34 }
 0x574   :  { %v511_v37 = vsel %vm447_vm15, %v2810_v35, 0.0 }
 0x575   :  { %2815 = vpow2.f32 %v494_v36  ;;  %512 = vadd.xlane.f32.xlu0 %v511_v37 }
 0x577   :  { %v2812_v39 = vpop.eup %2811 }
 0x578   :  { %v508_v40 = vsel %vm447_vm15, %v2812_v39, 0.0 }
 0x579   :  { %509 = vadd.xlane.f32.xlu1 %v508_v40 }
 0x57b   :  { %v2814_v41 = vpop.eup %2813 }
 0x57c   :  { %v514_v42 = vsel %vm447_vm15, %v2814_v41, 0.0 }
 0x57d   :  { %515 = vadd.xlane.f32.xlu1 %v514_v42 }
 0x57f   :  { %v2816_v44 = vpop.eup %2815 }
 0x580   :  { %v517_v45 = vsel %vm447_vm15, %v2816_v44, 0.0 }
 0x581   :  { %518 = vadd.xlane.f32.xlu0 %v517_v45 }
 0x58e   :  { %2783 = vrot.lane.b32.xlu1 %v3014_v4, %s2900_s22 }
 0x5f6   :  { %v501_v50 = vpop.xlane.xlu0 %500 }
 0x5f7   :  { %v498_v46 = vpop.xlane.xlu1 %497 }
 0x5f8   :  { %2817 = vrcp.f32 %v498_v46 }
 0x5f9   :  { %2819 = vrcp.f32 %v501_v50 }
 0x5fa   :  { %v507_v54 = vpop.xlane.xlu0 %506 }
 0x5fe   :  { %v504_v49 = vpop.xlane.xlu1 %503 }
 0x5ff   :  { %2821 = vrcp.f32 %v504_v49 }
 0x600   :  { %2823 = vrcp.f32 %v507_v54 }
 0x602   :  { %v2818_v47 = vpop.eup %2817  ;;  %v513_v56 = vpop.xlane.xlu0 %512 }
 0x603   :  { %v521_v52 = vmul.f32 %v2818_v47, %v2804_v13  ;;  %v2820_v63 = vpop.eup %2819 }
 0x604   :  { %v523_v1 = vmul.f32 %v2820_v63, %v3115_v10 }
 0x605   :  { %2426 = vmatprep.mubr.msk.f32.mxu0 %vm447_vm15, %v521_v52 }
 0x606   :  { %v510_v53 = vpop.xlane.xlu1 %509 }
 0x607   :  { %2825 = vrcp.f32 %v510_v53 }
 0x608   :  { %2827 = vrcp.f32 %v513_v56  ;;  %v2173_v56 = vld [vmem:[%s3507_s5 + $0x9] ss:$0 sm:$0xff] }
 0x609   :  { %v2822_v0 = vpop.eup %2821 }
 0x60a   :  { %v516_v55 = vpop.xlane.xlu1 %515  ;;  %v2824_v3 = vpop.eup %2823  ;;  %v525_v5 = vmul.f32 %v2822_v0, %v2808_v28 }
 0x60b   :  { %2829 = vrcp.f32 %v516_v55  ;;  %v527_v7 = vmul.f32 %v2824_v3, %v3120_v21  ;;  %v686_v21 = vld [vmem:[%s3509_s4 + $0x8] sm:$0xff] }
 0x60c   :  { %v2647_v22 = vpack.c.bf16 %v686_v21, %v685_v16  ;;  %v816_v16 = vld [vmem:[%s3506_s3 + $0x28] sm:$0xff]  ;;  %v817_v21 = vld [vmem:[%s3506_s3 + $0x38] sm:$0xff] }
 0x60e   :  { %v2784_v57 = vpop.permute.xlu1 %2783  ;;  %v519_v4 = vpop.xlane.xlu0 %518  ;;  %2648 = vmatprep.subr.bf16.mxu1 %v2647_v22 }
 0x60f   :  { %v2786_v59 = vunpack.i.h.bf16 %v2784_v57  ;;  %v2785_v61 = vunpack.i.l.bf16 %v2784_v57  ;;  %2831 = vrcp.f32 %v519_v4  ;;  %2650 = vmatpush3.bf16.msra.mxu1 %v2647_v22  ;;  %v2659_v22 = vpack.c.bf16 %v817_v21, %v816_v16 }
 0x610   :  { %2652 = vmatprep.subr.bf16.mxu1 %v2651_v27 }
 0x611   :  { %v2643_v62 = vpack.c.bf16 %v2786_v59, %v2785_v61  ;;  %v2826_v6 = vpop.eup %2825 }
 0x612   :  { %v2828_v8 = vpop.eup %2827  ;;  %v529_v11 = vmul.f32 %v2826_v6, %v2812_v39 }
 0x613   :  { %2644 = vmatprep.subr.bf16.mxu0 %v2643_v62  ;;  %v531_v14 = vmul.f32 %v2828_v8, %v2810_v35  ;;  %2654 = vmatpush3.bf16.msra.mxu1 %v2651_v27 }
 0x614   :  { %2646 = vmatpush3.bf16.msra.mxu0 %v2643_v62 }
 0x615   :  { %v2830_v13 = vpop.eup %2829 }
 0x616   :  { %v533_v19 = vmul.f32 %v2830_v13, %v2814_v41 }
 0x617   :  { %2427 = vmatmul.mubr.msk.f32.vlgmr.msra.gmra.mrb[2].mxu0 %vm447_vm15, %v523_v1 }
 0x618   :  { %2429 = vmatprep.mubr.msk.f32.mxu0 %vm447_vm15, %v525_v5 }
 0x619   :  { %v2832_v17 = vpop.eup %2831 }
 0x61a   :  { %v535_v10 = vmul.f32 %v2832_v17, %v2816_v44 }
 0x61b   :  { %2430 = vmatmul.mubr.msk.f32.gmra.mrb[4].mxu0 %vm447_vm15, %v527_v7 }
 0x61c   :  { %2432 = vmatprep.mubr.msk.f32.mxu0 %vm447_vm15, %v529_v11 }
 0x61f   :  { %2433 = vmatmul.mubr.msk.f32.gmra.mrb[6].mxu0 %vm447_vm15, %v531_v14 }
 0x620   :  { %2435 = vmatprep.mubr.msk.f32.mxu0 %vm447_vm15, %v533_v19  ;;  %v815_v19 = vld [vmem:[%s3506_s3 + $0x18] sm:$0xff] }
 0x623   :  { %2436 = vmatmul.mubr.msk.f32.gmra.mrb[8].mxu0 %vm447_vm15, %v535_v10 }
 0x6ea   :  { %v2428_v28 = vpop.f32.mrb[2].mxu0 }
 0x6eb   :  { %v632_v30 = vpop.f32.mrb[3].mxu0  ;;  %v672_v33 = vmul.f32 %v2428_v28, %v3012_v2 }
 0x6ec   :  { %v671_v36 = vmul.f32 %v3012_v2, %v632_v30 }
 0x6ee   :  { %v2431_v31 = vpop.f32.mrb[4].mxu0 }
 0x6ef   :  { %v674_v34 = vmul.f32 %v2431_v31, %v3035_v12  ;;  %v642_v35 = vpop.f32.mrb[5].mxu0 }
 0x6f0   :  { %v673_v37 = vmul.f32 %v3035_v12, %v642_v35 }
 0x6f1   :  { %v680_v39 = vadd.f32 %v674_v34, %v672_v33  ;;  %v2176_v34 = vld [vmem:[%s3507_s5 + $0xc] ss:$0 sm:$0xff] }
 0x6f2   :  { %v679_v40 = vadd.f32 %v673_v37, %v671_v36  ;;  %v2434_v41 = vpop.f32.mrb[6].mxu0  ;;  %v2177_v36 = vld [vmem:[%s3507_s5 + $0xd] ss:$0 sm:$0xff] }
 0x6f3   :  { %v676_v42 = vmul.f32 %v2434_v41, %v3043_v15  ;;  %v652_v44 = vpop.f32.mrb[7].mxu0 }
 0x6f4   :  { %v675_v45 = vmul.f32 %v3043_v15, %v652_v44 }
 0x6f5   :  { %v682_v46 = vadd.f32 %v680_v39, %v676_v42 }
 0x6f6   :  { %v681_v47 = vadd.f32 %v679_v40, %v675_v45  ;;  %v2437_v49 = vpop.f32.mrb[8].mxu0  ;;  %v957_v45 = vld [vmem:[%s3509_s4 + $0x20] sm:$0xff] }
 0x6f7   :  { %v678_v50 = vmul.f32 %v2437_v49, %v3050_v20  ;;  %v662_v52 = vpop.f32.mrb[9].mxu0  ;;  %v959_v49 = vld [vmem:[%s3509_s4 + $0x30] sm:$0xff] }
 0x6f8   :  { %v677_v53 = vmul.f32 %v3050_v20, %v662_v52 }
 0x6f9   :  { %v684_v54 = vadd.f32 %v682_v46, %v678_v50  ;;  %v958_v46 = vld [vmem:[%s3509_s4 + $0x28] sm:$0xff]  ;;  %v960_v50 = vld [vmem:[%s3509_s4 + $0x38] sm:$0xff] }
 0x6fa   :  { %v683_v55 = vadd.f32 %v681_v47, %v677_v53  ;;  %v2663_v47 = vpack.c.bf16 %v958_v46, %v957_v45  ;;  %v2667_v52 = vpack.c.bf16 %v960_v50, %v959_v49  ;;  %v961_v53 = vld [vmem:[%s3509_s4 + $0x40] sm:$0xff] }
 0x6fc   :  { %2446 = vmatprep.mubr.msk.f32.mxu1 %vm132_vm3, %v683_v55  ;;  %2664 = vmatprep.subr.bf16.mxu1 %v2663_v47 }
 0x6fd   :  { %2447 = vmatmul.mubr.msk.f32.vlgmr.msra.gmra.mrb[10].mxu1 %vm132_vm3, %v684_v54  ;;  %v962_v54 = vld [vmem:[%s3509_s4 + $0x48] sm:$0xff] }
 0x6fe   :  { %2666 = vmatpush3.bf16.msra.mxu1 %v2663_v47  ;;  %v2671_v55 = vpack.c.bf16 %v962_v54, %v961_v53 }
 0x6ff   :  { %2668 = vmatprep.subr.bf16.mxu1 %v2667_v52 }
 0x702   :  { %2670 = vmatpush3.bf16.msra.mxu1 %v2667_v52 }
 0x703   :  { %2672 = vmatprep.subr.bf16.mxu1 %v2671_v55 }
 0x706   :  { %2674 = vmatpush3.bf16.msra.mxu1 %v2671_v55 }
 0x7d0   :  { %v2448_v57 = vpop.f32.mrb[10].mxu1 }
 0x7d1   :  { %v765_v59 = vpop.f32.mrb[11].mxu1  ;;  %v771_v61 = vadd.f32 %v2448_v57, %v2173_v56  ;;  %v964_v57 = vld [vmem:[%s3509_s4 + $0x58] sm:$0xff] }
 0x7d2   :  { %v766_v4 = vadd.f32 %v2173_v56, %v765_v59  ;;  %v963_v56 = vld [vmem:[%s3509_s4 + $0x50] sm:$0xff] }
 0x7d3   :  { %v775_v0 = vadd.f32 %v771_v61, %v3003_v60  ;;  %v814_v60 = vld [vmem:[%s3506_s3 + $0x8] sm:$0xff]  ;;  %v2675_v59 = vpack.c.bf16 %v964_v57, %v963_v56  ;;  %v965_v61 = vld [vmem:[%s3509_s4 + $0x60] sm:$0xff] }
 0x7d4   :  { %v774_v62 = vadd.f32 %v766_v4, %v2999_v58  ;;  %v2655_v10 = vpack.c.bf16 %v815_v19, %v814_v60  ;;  %v966_v4 = vld [vmem:[%s3509_s4 + $0x68] sm:$0xff] }
 0x7d5   :  { %v779_v1 = vsel %vm132_vm3, %v775_v0, 0.0  ;;  %2676 = vmatprep.subr.bf16.mxu1 %v2675_v59 }
 0x7d6   :  { %v776_v63 = vsel %vm132_vm3, %v774_v62, 0.0  ;;  %2656 = vmatprep.subr.bf16.mxu0 %v2655_v10  ;;  %2678 = vmatpush3.bf16.msra.mxu1 %v2675_v59 }
 0x7d7   :  { %777 = vadd.xlane.f32.xlu0 %v776_v63  ;;  %2658 = vmatpush3.bf16.msra.mxu0 %v2655_v10  ;;  %v967_v63 = vld [vmem:[%s3509_s4 + $0x70] sm:$0xff] }
 0x7d8   :  { %2660 = vmatprep.subr.bf16.mxu0 %v2659_v22 }
 0x7db   :  { %780 = vadd.xlane.f32.xlu0 %v779_v1  ;;  %2662 = vmatpush3.bf16.msra.mxu0 %v2659_v22 }
 0x864   :  { %v778_v3 = vpop.xlane.xlu0 %777 }
 0x865   :  { %v782_v5 = vmul.f32 0.03125, %v778_v3  ;;  %v969_v3 = vld [vmem:[%s3509_s4 + $0x80] sm:$0xff] }
 0x867   :  { %v784_v6 = vsub.f32 %v774_v62, %v782_v5  ;;  %v2679_v62 = vpack.c.bf16 %v966_v4, %v965_v61  ;;  %v970_v5 = vld [vmem:[%s3509_s4 + $0x88] sm:$0xff] }
 0x868   :  { %v781_v7 = vpop.xlane.xlu0 %780 }
 0x869   :  { %v783_v8 = vmul.f32 0.03125, %v781_v7  ;;  %v786_v11 = vmul.f32 %v784_v6, %v784_v6  ;;  %2680 = vmatprep.subr.bf16.mxu1 %v2679_v62  ;;  %v971_v7 = vld [vmem:[%s3509_s4 + $0x90] sm:$0xff] }
 0x86a   :  { %2682 = vmatpush3.bf16.msra.mxu1 %v2679_v62 }
 0x86b   :  { %v785_v13 = vsub.f32 %v775_v0, %v783_v8  ;;  %v788_v14 = vsel %vm132_vm3, %v786_v11, 0.0  ;;  %v968_v0 = vld [vmem:[%s3509_s4 + $0x78] sm:$0xff] }
 0x86c   :  { %789 = vadd.xlane.f32.xlu0 %v788_v14  ;;  %v2683_v1 = vpack.c.bf16 %v968_v0, %v967_v63  ;;  %v972_v8 = vld [vmem:[%s3509_s4 + $0x98] sm:$0xff] }
 0x86d   :  { %v787_v17 = vmul.f32 %v785_v13, %v785_v13  ;;  %v2691_v11 = vpack.c.bf16 %v972_v8, %v971_v7 }
 0x86e   :  { %2684 = vmatprep.subr.bf16.mxu1 %v2683_v1 }
 0x86f   :  { %v791_v58 = vsel %vm132_vm3, %v787_v17, 0.0  ;;  %2686 = vmatpush3.bf16.msra.mxu1 %v2683_v1 }
 0x870   :  { %792 = vadd.xlane.f32.xlu0 %v791_v58 }
 0x8f9   :  { %v790_v25 = vpop.xlane.xlu0 %789 }
 0x8fa   :  { %v794_v26 = vmul.f32 0.03125, %v790_v25 }
 0x8fc   :  { %v796_v27 = vadd.f32 1e-05, %v794_v26 }
 0x8fd   :  { %v793_v28 = vpop.xlane.xlu0 %792 }
 0x8fe   :  { %2833 = vrsqrt.f32 %v796_v27  ;;  %v795_v30 = vmul.f32 0.03125, %v793_v28 }
 0x900   :  { %v797_v31 = vadd.f32 1e-05, %v795_v30 }
 0x902   :  { %2835 = vrsqrt.f32 %v797_v31 }
 0x908   :  { %v2834_v33 = vpop.eup %2833 }
 0x909   :  { %v800_v35 = vmul.f32 %v2834_v33, %v784_v6  ;;  %v2687_v6 = vpack.c.bf16 %v970_v5, %v969_v3 }
 0x90b   :  { %v806_v37 = vmul.f32 %v2176_v34, %v800_v35  ;;  %2688 = vmatprep.subr.bf16.mxu1 %v2687_v6 }
 0x90c   :  { %v2836_v39 = vpop.eup %2835  ;;  %2690 = vmatpush3.bf16.msra.mxu1 %v2687_v6 }
 0x90d   :  { %v801_v40 = vmul.f32 %v2836_v39, %v785_v13  ;;  %v3190_v41 = vadd.f32 %v2177_v36, %v806_v37  ;;  %2692 = vmatprep.subr.bf16.mxu1 %v2691_v11  ;;  %v2178_v13 = vld [vmem:[%s3507_s5 + $0xa] ss:$0 sm:$0xff] }
 0x90f   :  { %v807_v42 = vmul.f32 %v2176_v34, %v801_v40  ;;  %2457 = vmatprep.mubr.msk.f32.mxu0 %vm132_vm3, %v3190_v41 }
 0x910   :  { %2694 = vmatpush3.bf16.msra.mxu1 %v2691_v11 }
 0x911   :  { %v3194_v44 = vadd.f32 %v2177_v36, %v807_v42 }
 0x913   :  { %2458 = vmatmul.mubr.msk.f32.vlgmr.msra.gmra.mrb[10].mxu0 %vm132_vm3, %v3194_v44 }
 0x9e6   :  { %v2459_v14 = vpop.f32.mrb[10].mxu0 }
 0x9e7   :  { %v900_v17 = vadd.f32 %v2459_v14, %v2178_v13  ;;  %v894_v58 = vpop.f32.mrb[11].mxu0 }
 0x9e8   :  { %v895_v60 = vadd.f32 %v2178_v13, %v894_v58 }
 0x9e9   :  { %v906_v19 = vmul.f32 0.70710677, %v900_v17 }
 0x9ea   :  { %v905_v10 = vmul.f32 0.70710677, %v895_v60  ;;  %v903_v58 = vmul.f32 0.5, %v895_v60 }
 0x9eb   :  { %v908_v16 = vand.u32 2147483647, %v906_v19  ;;  %vm948_vm0 = vcmp.ge.f32.partialorder %v906_v19, 0.0 }
 0x9ec   :  { %v907_v21 = vand.u32 2147483647, %v905_v10  ;;  %vm947_vm1 = vcmp.ge.f32.partialorder %v905_v10, 0.0 }
 0x9ed   :  { %v910_v22 = vmul.f32 0.3275911, %v908_v16  ;;  %v936_v28 = vsub.f32 0.0, %v908_v16 }
 0x9ee   :  { %v909_v25 = vmul.f32 0.3275911, %v907_v21  ;;  %v935_v30 = vsub.f32 0.0, %v907_v21 }
 0x9ef   :  { %v912_v26 = vadd.f32 1.0, %v910_v22  ;;  %v938_v33 = vmul.f32 %v936_v28, %v908_v16 }
 0x9f0   :  { %v911_v27 = vadd.f32 1.0, %v909_v25  ;;  %v937_v36 = vmul.f32 %v935_v30, %v907_v21  ;;  %v904_v21 = vmul.f32 0.5, %v900_v17 }
 0x9f1   :  { %2837 = vrcp.f32 %v912_v26  ;;  %v941_v40 = vmul.f32 1.442695, %v938_v33  ;;  %v2181_v26 = vld [vmem:[%s3507_s5 + $0xb] ss:$0 sm:$0xff] }
 0x9f2   :  { %2839 = vrcp.f32 %v911_v27  ;;  %v939_v46 = vmul.f32 1.442695, %v937_v36 }
 0x9f3   :  { %2841 = vpow2.f32 %v941_v40 }
 0x9f4   :  { %2843 = vpow2.f32 %v939_v46  ;;  %v2185_v46 = vld [vmem:[%s3506_s3 + $0x50] sm:$0xff] }
 0x9fb   :  { %v2838_v31 = vpop.eup %2837 }
 0x9fc   :  { %v2840_v34 = vpop.eup %2839  ;;  %v918_v35 = vmul.f32 1.0614054, %v2838_v31 }
 0x9fd   :  { %v917_v37 = vmul.f32 1.0614054, %v2840_v34  ;;  %v2842_v62 = vpop.eup %2841 }
 0x9fe   :  { %v920_v39 = vadd.f32 -1.4531521, %v918_v35  ;;  %v2844_v0 = vpop.eup %2843 }
 0x9ff   :  { %v919_v42 = vadd.f32 -1.4531521, %v917_v37 }
 0xa00   :  { %v922_v45 = vmul.f32 %v2838_v31, %v920_v39 }
 0xa01   :  { %v921_v47 = vmul.f32 %v2840_v34, %v919_v42 }
 0xa02   :  { %v924_v49 = vadd.f32 1.4214138, %v922_v45 }
 0xa03   :  { %v923_v50 = vadd.f32 1.4214138, %v921_v47 }
 0xa04   :  { %v926_v52 = vmul.f32 %v2838_v31, %v924_v49  ;;  %v2186_v49 = vld [vmem:[%s3506_s3 + $0x60] sm:$0xff] }
 0xa05   :  { %v925_v53 = vmul.f32 %v2840_v34, %v923_v50  ;;  %v2187_v50 = vld [vmem:[%s3506_s3 + $0x70] sm:$0xff] }
 0xa06   :  { %v928_v54 = vadd.f32 -0.28449672, %v926_v52  ;;  %v2699_v52 = vpack.c.bf16 %v2187_v50, %v2186_v49 }
 0xa07   :  { %v927_v55 = vadd.f32 -0.28449672, %v925_v53 }
 0xa08   :  { %v930_v56 = vmul.f32 %v2838_v31, %v928_v54 }
 0xa09   :  { %v929_v57 = vmul.f32 %v2840_v34, %v927_v55 }
 0xa0a   :  { %v932_v59 = vadd.f32 0.2548296, %v930_v56 }
 0xa0b   :  { %v931_v61 = vadd.f32 0.2548296, %v929_v57 }
 0xa0c   :  { %v934_v4 = vmul.f32 %v2838_v31, %v932_v59 }
 0xa0d   :  { %v933_v63 = vmul.f32 %v2840_v34, %v931_v61 }
 0xa0e   :  { %v944_v1 = vmul.f32 %v2842_v62, %v934_v4  ;;  %v2182_v4 = vld [vmem:[%s3507_s5 + $0xe] ss:$0 sm:$0xff] }
 0xa0f   :  { %v943_v3 = vmul.f32 %v2844_v0, %v933_v63  ;;  %v2183_v63 = vld [vmem:[%s3507_s5 + $0xf] ss:$0 sm:$0xff] }
 0xa10   :  { %v946_v5 = vsub.f32 1.0, %v944_v1 }
 0xa11   :  { %v945_v6 = vsub.f32 1.0, %v943_v3 }
 0xa12   :  { %v950_v7 = vsub.f32 0.0, %v946_v5 }
 0xa13   :  { %v949_v8 = vsub.f32 0.0, %v945_v6 }
 0xa14   :  { %v952_v11 = vsel %vm948_vm0, %v946_v5, %v950_v7 }
 0xa15   :  { %v954_v13 = vadd.f32 1.0, %v952_v11  ;;  %v951_v14 = vsel %vm947_vm1, %v945_v6, %v949_v8  ;;  %v2188_v8 = vld [vmem:[%s3507_s5 + $0x10] ss:$0 sm:$0xff] }
 0xa16   :  { %v953_v16 = vadd.f32 1.0, %v951_v14 }
 0xa17   :  { %v956_v25 = vmul.f32 %v954_v13, %v904_v21 }
 0xa18   :  { %v955_v22 = vmul.f32 %v953_v16, %v903_v58 }
 0xa1a   :  { %2492 = vmatprep.mubr.f32.mxu1 %v955_v22 }
 0xa1b   :  { %2493 = vmatmul.mubr.f32.vlgmr.msra.gmra.mrb[12].mxu1 %v956_v25 }
 0xaee   :  { %v2494_v27 = vpop.f32.mrb[12].mxu1 }
 0xaef   :  { %v1049_v28 = vadd.f32 %v2494_v27, %v2181_v26  ;;  %v1043_v30 = vpop.f32.mrb[13].mxu1 }
 0xaf0   :  { %v1044_v19 = vadd.f32 %v2181_v26, %v1043_v30 }
 0xaf1   :  { %v1053_v31 = vadd.f32 %v1049_v28, %v3194_v44 }
 0xaf2   :  { %v1052_v10 = vadd.f32 %v1044_v19, %v3190_v41  ;;  %v2184_v41 = vld [vmem:[%s3506_s3 + $0x40] sm:$0xff] }
 0xaf3   :  { %v1057_v60 = vsel %vm132_vm3, %v1053_v31, 0.0  ;;  %v2695_v47 = vpack.c.bf16 %v2185_v46, %v2184_v41 }
 0xaf4   :  { %1058 = vadd.xlane.f32.xlu0 %v1057_v60  ;;  %v1054_v17 = vsel %vm132_vm3, %v1052_v10, 0.0 }
 0xaf5   :  { %1055 = vadd.xlane.f32.xlu1 %v1054_v17  ;;  %2696 = vmatprep.subr.bf16.mxu0 %v2695_v47 }
 0xaf6   :  { %2698 = vmatpush3.bf16.msra.mxu0 %v2695_v47 }
 0xaf7   :  { %2700 = vmatprep.subr.bf16.mxu0 %v2699_v52 }
 0xafa   :  { %2702 = vmatpush3.bf16.msra.mxu0 %v2699_v52 }
 0xb81   :  { %v1059_v33 = vpop.xlane.xlu0 %1058 }
 0xb82   :  { %v1061_v34 = vmul.f32 0.03125, %v1059_v33  ;;  %v1056_v35 = vpop.xlane.xlu1 %1055 }
 0xb83   :  { %v1060_v36 = vmul.f32 0.03125, %v1056_v35 }
 0xb84   :  { %v1063_v37 = vsub.f32 %v1053_v31, %v1061_v34 }
 0xb85   :  { %v1062_v39 = vsub.f32 %v1052_v10, %v1060_v36 }
 0xb86   :  { %v1065_v45 = vmul.f32 %v1063_v37, %v1063_v37 }
 0xb87   :  { %v1064_v40 = vmul.f32 %v1062_v39, %v1062_v39 }
 0xb88   :  { %v1069_v44 = vsel %vm132_vm3, %v1065_v45, 0.0 }
 0xb89   :  { %v1066_v42 = vsel %vm132_vm3, %v1064_v40, 0.0 }
 0xb8a   :  { %1067 = vadd.xlane.f32.xlu0 %v1066_v42 }
 0xb8e   :  { %1070 = vadd.xlane.f32.xlu0 %v1069_v44 }
 0xc17   :  { %v1068_v53 = vpop.xlane.xlu0 %1067 }
 0xc18   :  { %v1072_v54 = vmul.f32 0.03125, %v1068_v53 }
 0xc1a   :  { %v1074_v55 = vadd.f32 1e-05, %v1072_v54 }
 0xc1b   :  { %v1071_v56 = vpop.xlane.xlu0 %1070 }
 0xc1c   :  { %2845 = vrsqrt.f32 %v1074_v55  ;;  %v1073_v57 = vmul.f32 0.03125, %v1071_v56 }
 0xc1e   :  { %v1075_v59 = vadd.f32 1e-05, %v1073_v57 }
 0xc20   :  { %2847 = vrsqrt.f32 %v1075_v59 }
 0xc26   :  { %v2846_v61 = vpop.eup %2845 }
 0xc27   :  { %v1078_v62 = vmul.f32 %v2846_v61, %v1062_v39 }
 0xc29   :  { %v1084_v0 = vmul.f32 %v2182_v4, %v1078_v62 }
 0xc2a   :  { %v2848_v1 = vpop.eup %2847 }
 0xc2b   :  { %v1079_v3 = vmul.f32 %v2848_v1, %v1063_v37  ;;  %v3276_v5 = vadd.f32 %v2183_v63, %v1084_v0 }
 0xc2d   :  { %v1085_v6 = vmul.f32 %v2182_v4, %v1079_v3  ;;  %2503 = vmatprep.mubr.msk.f32.mxu0 %vm132_vm3, %v3276_v5 }
 0xc2f   :  { %v3280_v7 = vadd.f32 %v2183_v63, %v1085_v6 }
 0xc31   :  { %2504 = vmatmul.mubr.msk.f32.vlgmr.msra.gmra.mrb[12].mxu0 %vm132_vm3, %v3280_v7 }
 0xd04   :  { %v2505_v11 = vpop.f32.mrb[12].mxu0 }
 0xd05   :  { %v1187_v13 = vadd.f32 %v2505_v11, %v2188_v8  ;;  %v1181_v14 = vpop.f32.mrb[13].mxu0 }
 0xd06   :  { %v1182_v58 = vadd.f32 %v2188_v8, %v1181_v14 }
 0xd07   :  { %v1191_v30 = vmul.f32 0.35355338, %v1187_v13 }
 0xd08   :  { %v1190_v16 = vmul.f32 0.35355338, %v1182_v58  ;;  %v3287_v21 = vpack.i.bf16 %v1187_v13, %v1182_v58 }
 0xd09   :  { %v1193_v19 = vmul.f32 %v3012_v2, %v1191_v30  ;;  %v1195_v10 = vmul.f32 %v3035_v12, %v1191_v30  ;;  %v1197_v9 = vmul.f32 %v3043_v15, %v1191_v30  ;;  %v1199_v33 = vmul.f32 %v3050_v20, %v1191_v30 }
 0xd0a   :  { %2788 = vrot.lane.b32.xlu0 %v3287_v21, %s2899_s7  ;;  %v1192_v22 = vmul.f32 %v3012_v2, %v1190_v16  ;;  %v1194_v31 = vmul.f32 %v3035_v12, %v1190_v16  ;;  %v1196_v60 = vmul.f32 %v3043_v15, %v1190_v16  ;;  %v1198_v17 = vmul.f32 %v3050_v20, %v1190_v16 }
 0xd0c   :  { %2510 = vmatprep.mubr.msk.f32.mxu0 %vm132_vm3, %v1192_v22 }
 0xd7c   :  { %v2789_v25 = vpop.permute.xlu0 %2788 }
 0xd7d   :  { %v2791_v26 = vunpack.i.h.bf16 %v2789_v25  ;;  %v2790_v27 = vunpack.i.l.bf16 %v2789_v25 }
 0xd7f   :  { %v2703_v28 = vpack.c.bf16 %v2791_v26, %v2790_v27 }
 0xd81   :  { %2705 = vmatprep.subr.msk.bf16.mxu0 %vm3022_vm5, %v2703_v28 }
 0xd82   :  { %2708 = vmatpush3.bf16.xpose.msk.msra.mxu0 %vm3022_vm5, %v2703_v28  ;;  %vm2902_vm5 = vmmov 0  }
 0xd89   :  { %2511 = vmatmul.mubr.msk.f32.vlgmr.msra.gmra.mrb[14].mxu0 %vm132_vm3, %v1193_v19 }
 0xd8a   :  { %2513 = vmatprep.mubr.msk.f32.mxu0 %vm132_vm3, %v1194_v31 }
 0xd8d   :  { %2514 = vmatmul.mubr.msk.f32.gmra.mrb[16].mxu0 %vm132_vm3, %v1195_v10 }
 0xd8e   :  { %2516 = vmatprep.mubr.msk.f32.mxu0 %vm132_vm3, %v1196_v60 }
 0xd91   :  { %2517 = vmatmul.mubr.msk.f32.gmra.mrb[18].mxu0 %vm132_vm3, %v1197_v9 }
 0xd92   :  { %2519 = vmatprep.mubr.msk.f32.mxu0 %vm132_vm3, %v1198_v17 }
 0xd95   :  { %2520 = vmatmul.mubr.msk.f32.gmra.mrb[20].mxu0 %vm132_vm3, %v1199_v33 }
 0xe5c   :  { %v2512_v34 = vpop.f32.mrb[14].mxu0 }
 0xe5d   :  { %v1306_v35 = vadd.f32 %v2512_v34, %v3062_v23  ;;  %v1300_v36 = vpop.f32.mrb[15].mxu0 }
 0xe5e   :  { %v1301_v37 = vadd.f32 %v1300_v36, %v3067_v24 }
 0xe5f   :  { %v1342_v39 = vsel %vm447_vm15, %v1306_v35, -inf }
 0xe60   :  { %1343 = vmax.xlane.f32.xlu1 %v1342_v39  ;;  %v2515_v40 = vpop.f32.mrb[16].mxu0  ;;  %v1339_v42 = vsel %vm447_vm15, %v1301_v37, -inf }
 0xe61   :  { %v1316_v45 = vadd.f32 %v2515_v40, %v3074_v29  ;;  %v1310_v44 = vpop.f32.mrb[17].mxu0  ;;  %1340 = vmax.xlane.f32.xlu0 %v1339_v42 }
 0xe62   :  { %v1311_v41 = vadd.f32 %v1310_v44, %v3080_v32 }
 0xe63   :  { %v1348_v46 = vsel %vm447_vm15, %v1316_v45, -inf }
 0xe64   :  { %1349 = vmax.xlane.f32.xlu1 %v1348_v46  ;;  %v2518_v47 = vpop.f32.mrb[18].mxu0  ;;  %v1345_v24 = vsel %vm447_vm15, %v1311_v41, -inf }
 0xe65   :  { %v1320_v23 = vpop.f32.mrb[19].mxu0  ;;  %v1326_v49 = vadd.f32 %v2518_v47, %v3089_v38 }
 0xe66   :  { %v1321_v53 = vadd.f32 %v1320_v23, %v3096_v43 }
 0xe67   :  { %v1354_v29 = vsel %vm447_vm15, %v1326_v49, -inf }
 0xe68   :  { %v2521_v50 = vpop.f32.mrb[20].mxu0  ;;  %1346 = vmax.xlane.f32.xlu1 %v1345_v24  ;;  %v1351_v32 = vsel %vm447_vm15, %v1321_v53, -inf }
 0xe69   :  { %v1330_v52 = vpop.f32.mrb[21].mxu0  ;;  %v1336_v55 = vadd.f32 %v2521_v50, %v3110_v51 }
 0xe6a   :  { %v1331_v54 = vadd.f32 %v1330_v52, %v3103_v48 }
 0xe6b   :  { %v1360_v38 = vsel %vm447_vm15, %v1336_v55, -inf }
 0xe6c   :  { %1355 = vmax.xlane.f32.xlu1 %v1354_v29  ;;  %v1357_v56 = vsel %vm447_vm15, %v1331_v54, -inf }
 0xe70   :  { %1352 = vmax.xlane.f32.xlu1 %v1351_v32 }
 0xe74   :  { %1358 = vmax.xlane.f32.xlu1 %v1357_v56 }
 0xe78   :  { %1361 = vmax.xlane.f32.xlu1 %v1360_v38 }
 0xeed   :  { %v1344_v57 = vpop.xlane.xlu1 %1343 }
 0xeee   :  { %v1364_v59 = vsub.f32 %v1306_v35, %v1344_v57  ;;  %v1341_v61 = vpop.xlane.xlu0 %1340 }
 0xeef   :  { %v1363_v43 = vsub.f32 %v1301_v37, %v1341_v61 }
 0xef0   :  { %v1373_v4 = vmul.f32 1.442695, %v1364_v59 }
 0xef1   :  { %v1371_v62 = vmul.f32 1.442695, %v1363_v43  ;;  %v1350_v63 = vpop.xlane.xlu1 %1349 }
 0xef2   :  { %2849 = vpow2.f32 %v1373_v4  ;;  %v1366_v48 = vsub.f32 %v1316_v45, %v1350_v63 }
 0xef3   :  { %2851 = vpow2.f32 %v1371_v62 }
 0xef4   :  { %v1377_v0 = vmul.f32 1.442695, %v1366_v48 }
 0xef5   :  { %v1347_v1 = vpop.xlane.xlu1 %1346 }
 0xef6   :  { %2853 = vpow2.f32 %v1377_v0  ;;  %v1365_v51 = vsub.f32 %v1311_v41, %v1347_v1 }
 0xef8   :  { %v1375_v3 = vmul.f32 1.442695, %v1365_v51 }
 0xef9   :  { %v1356_v6 = vpop.xlane.xlu1 %1355 }
 0xefa   :  { %2855 = vpow2.f32 %v1375_v3  ;;  %v1368_v8 = vsub.f32 %v1326_v49, %v1356_v6  ;;  %v2209_v3 = vld [vmem:[%s3509_s4 + $0xa0] sm:$0xff]  ;;  %v2210_v6 = vld [vmem:[%s3509_s4 + $0xa8] sm:$0xff] }
 0xefc   :  { %v3327_v11 = vpop.eup %2849  ;;  %v1381_v13 = vmul.f32 1.442695, %v1368_v8  ;;  %v2713_v8 = vpack.c.bf16 %v2210_v6, %v2209_v3 }
 0xefd   :  { %v2852_v14 = vpop.eup %2851  ;;  %v1353_v58 = vpop.xlane.xlu1 %1352  ;;  %v1390_v16 = vsel %vm447_vm15, %v3327_v11, 0.0 }
 0xefe   :  { %2857 = vpow2.f32 %v1381_v13  ;;  %v1367_v22 = vsub.f32 %v1321_v53, %v1353_v58  ;;  %1391 = vadd.xlane.f32.xlu0 %v1390_v16  ;;  %v1387_v25 = vsel %vm447_vm15, %v2852_v14, 0.0  ;;  %2714 = vmatprep.subr.bf16.mxu1 %v2713_v8  ;;  %v2212_v13 = vld [vmem:[%s3509_s4 + $0xb8] sm:$0xff] }
 0xeff   :  { %1388 = vadd.xlane.f32.xlu1 %v1387_v25  ;;  %2716 = vmatpush3.bf16.msra.mxu1 %v2713_v8 }
 0xf00   :  { %v2854_v26 = vpop.eup %2853  ;;  %v1379_v27 = vmul.f32 1.442695, %v1367_v22 }
 0xf01   :  { %v1359_v28 = vpop.xlane.xlu1 %1358  ;;  %v1396_v30 = vsel %vm447_vm15, %v2854_v26, 0.0 }
 0xf02   :  { %2859 = vpow2.f32 %v1379_v27  ;;  %v1369_v19 = vsub.f32 %v1331_v54, %v1359_v28  ;;  %1397 = vadd.xlane.f32.xlu0 %v1396_v30 }
 0xf04   :  { %v2856_v31 = vpop.eup %2855  ;;  %v1383_v10 = vmul.f32 1.442695, %v1369_v19 }
 0xf05   :  { %v1362_v60 = vpop.xlane.xlu1 %1361  ;;  %v1393_v9 = vsel %vm447_vm15, %v2856_v31, 0.0 }
 0xf06   :  { %2861 = vpow2.f32 %v1383_v10  ;;  %v1370_v17 = vsub.f32 %v1336_v55, %v1362_v60  ;;  %1394 = vadd.xlane.f32.xlu1 %v1393_v9 }
 0xf08   :  { %v2858_v33 = vpop.eup %2857  ;;  %v1385_v34 = vmul.f32 1.442695, %v1370_v17 }
 0xf09   :  { %v1402_v35 = vsel %vm447_vm15, %v2858_v33, 0.0 }
 0xf0a   :  { %2863 = vpow2.f32 %v1385_v34  ;;  %1403 = vadd.xlane.f32.xlu0 %v1402_v35 }
 0xf0c   :  { %v2860_v36 = vpop.eup %2859 }
 0xf0d   :  { %v1399_v37 = vsel %vm447_vm15, %v2860_v36, 0.0 }
 0xf0e   :  { %1400 = vadd.xlane.f32.xlu1 %v1399_v37 }
 0xf10   :  { %v2862_v39 = vpop.eup %2861 }
 0xf11   :  { %v1405_v40 = vsel %vm447_vm15, %v2862_v39, 0.0 }
 0xf12   :  { %1406 = vadd.xlane.f32.xlu1 %v1405_v40 }
 0xf14   :  { %v2864_v42 = vpop.eup %2863 }
 0xf15   :  { %v1408_v45 = vsel %vm447_vm15, %v2864_v42, 0.0 }
 0xf16   :  { %1409 = vadd.xlane.f32.xlu0 %v1408_v45 }
 0xf23   :  { %2793 = vrot.lane.b32.xlu1 %v3287_v21, %s2900_s22 }
 0xf8b   :  { %v1392_v47 = vpop.xlane.xlu0 %1391 }
 0xf8c   :  { %v1389_v44 = vpop.xlane.xlu1 %1388 }
 0xf8d   :  { %2865 = vrcp.f32 %v1389_v44 }
 0xf8e   :  { %2867 = vrcp.f32 %v1392_v47 }
 0xf8f   :  { %v1398_v24 = vpop.xlane.xlu0 %1397 }
 0xf93   :  { %v1395_v46 = vpop.xlane.xlu1 %1394 }
 0xf94   :  { %2869 = vrcp.f32 %v1395_v46 }
 0xf95   :  { %2871 = vrcp.f32 %v1398_v24 }
 0xf97   :  { %v2866_v41 = vpop.eup %2865  ;;  %v1404_v52 = vpop.xlane.xlu0 %1403 }
 0xf98   :  { %v1412_v23 = vmul.f32 %v2866_v41, %v2852_v14  ;;  %v2868_v55 = vpop.eup %2867 }
 0xf99   :  { %v1414_v38 = vmul.f32 %v2868_v55, %v3327_v11  ;;  %v2211_v11 = vld [vmem:[%s3509_s4 + $0xb0] sm:$0xff] }
 0xf9a   :  { %2526 = vmatprep.mubr.msk.f32.mxu0 %vm447_vm15, %v1412_v23  ;;  %v2717_v14 = vpack.c.bf16 %v2212_v13, %v2211_v11 }
 0xf9b   :  { %v1401_v49 = vpop.xlane.xlu1 %1400 }
 0xf9c   :  { %2873 = vrcp.f32 %v1401_v49  ;;  %2718 = vmatprep.subr.bf16.mxu1 %v2717_v14 }
 0xf9d   :  { %2875 = vrcp.f32 %v1404_v52  ;;  %2720 = vmatpush3.bf16.msra.mxu1 %v2717_v14 }
 0xf9e   :  { %v2870_v56 = vpop.eup %2869 }
 0xf9f   :  { %v1407_v50 = vpop.xlane.xlu1 %1406  ;;  %v2872_v57 = vpop.eup %2871  ;;  %v1416_v59 = vmul.f32 %v2870_v56, %v2856_v31  ;;  %v2220_v56 = vld [vmem:[%s3506_s3 + $0x68] sm:$0xff] }
 0xfa0   :  { %2877 = vrcp.f32 %v1407_v50  ;;  %v1418_v43 = vmul.f32 %v2872_v57, %v2854_v26 }
 0xfa3   :  { %v2794_v53 = vpop.permute.xlu1 %2793  ;;  %v1410_v32 = vpop.xlane.xlu0 %1409 }
 0xfa4   :  { %v2796_v29 = vunpack.i.h.bf16 %v2794_v53  ;;  %v2795_v54 = vunpack.i.l.bf16 %v2794_v53  ;;  %2879 = vrcp.f32 %v1410_v32  ;;  %v2219_v32 = vld [vmem:[%s3506_s3 + $0x58] sm:$0xff] }
 0xfa6   :  { %v2709_v21 = vpack.c.bf16 %v2796_v29, %v2795_v54  ;;  %v2874_v61 = vpop.eup %2873 }
 0xfa7   :  { %v2876_v4 = vpop.eup %2875  ;;  %v1420_v62 = vmul.f32 %v2874_v61, %v2860_v36 }
 0xfa8   :  { %2710 = vmatprep.subr.bf16.mxu0 %v2709_v21  ;;  %v1422_v48 = vmul.f32 %v2876_v4, %v2858_v33 }
 0xfa9   :  { %2712 = vmatpush3.bf16.msra.mxu0 %v2709_v21 }
 0xfaa   :  { %v2878_v63 = vpop.eup %2877 }
 0xfab   :  { %v1424_v1 = vmul.f32 %v2878_v63, %v2862_v39 }
 0xfac   :  { %2527 = vmatmul.mubr.msk.f32.vlgmr.msra.gmra.mrb[22].mxu0 %vm447_vm15, %v1414_v38  ;;  %v2221_v38 = vld [vmem:[%s3506_s3 + $0x78] sm:$0xff] }
 0xfad   :  { %2529 = vmatprep.mubr.msk.f32.mxu0 %vm447_vm15, %v1416_v59  ;;  %v2725_v57 = vpack.c.bf16 %v2221_v38, %v2220_v56 }
 0xfae   :  { %v2880_v0 = vpop.eup %2879 }
 0xfaf   :  { %v1426_v51 = vmul.f32 %v2880_v0, %v2864_v42  ;;  %v2216_v0 = vld [vmem:[%s3507_s5 + $0x14] ss:$0 sm:$0xff] }
 0xfb0   :  { %2530 = vmatmul.mubr.msk.f32.gmra.mrb[24].mxu0 %vm447_vm15, %v1418_v43 }
 0xfb1   :  { %2532 = vmatprep.mubr.msk.f32.mxu0 %vm447_vm15, %v1420_v62 }
 0xfb4   :  { %2533 = vmatmul.mubr.msk.f32.gmra.mrb[26].mxu0 %vm447_vm15, %v1422_v48 }
 0xfb5   :  { %2535 = vmatprep.mubr.msk.f32.mxu0 %vm447_vm15, %v1424_v1 }
 0xfb8   :  { %2536 = vmatmul.mubr.msk.f32.gmra.mrb[28].mxu0 %vm447_vm15, %v1426_v51  ;;  %v2217_v51 = vld [vmem:[%s3507_s5 + $0x15] ss:$0 sm:$0xff] }
0x107f   :  { %v2528_v58 = vpop.f32.mrb[22].mxu0 }
0x1080   :  { %v1523_v16 = vpop.f32.mrb[23].mxu0  ;;  %v1563_v25 = vmul.f32 %v2528_v58, %v3012_v2  ;;  %v2225_v58 = vld [vmem:[%s3509_s4 + $0xc0] sm:$0xff] }
0x1081   :  { %v1562_v28 = vmul.f32 %v3012_v2, %v1523_v16  ;;  %v2226_v16 = vld [vmem:[%s3509_s4 + $0xc8] sm:$0xff] }
0x1083   :  { %v2531_v22 = vpop.f32.mrb[24].mxu0 }
0x1084   :  { %v1565_v26 = vmul.f32 %v2531_v22, %v3035_v12  ;;  %v1533_v27 = vpop.f32.mrb[25].mxu0  ;;  %v2729_v22 = vpack.c.bf16 %v2226_v16, %v2225_v58 }
0x1085   :  { %v1564_v30 = vmul.f32 %v3035_v12, %v1533_v27  ;;  %v2213_v12 = vld [vmem:[%s3507_s5 + $0x11] ss:$0 sm:$0xff] }
0x1086   :  { %v1571_v19 = vadd.f32 %v1565_v26, %v1563_v25  ;;  %2730 = vmatprep.subr.bf16.mxu0 %v2729_v22  ;;  %v2227_v25 = vld [vmem:[%s3509_s4 + $0xd0] sm:$0xff]  ;;  %v2228_v26 = vld [vmem:[%s3509_s4 + $0xd8] sm:$0xff] }
0x1087   :  { %v1570_v31 = vadd.f32 %v1564_v30, %v1562_v28  ;;  %v2534_v10 = vpop.f32.mrb[26].mxu0  ;;  %2732 = vmatpush3.bf16.msra.mxu0 %v2729_v22  ;;  %v2733_v27 = vpack.c.bf16 %v2228_v26, %v2227_v25  ;;  %v2229_v28 = vld [vmem:[%s3509_s4 + $0xe0] sm:$0xff]  ;;  %v2230_v30 = vld [vmem:[%s3509_s4 + $0xe8] sm:$0xff] }
0x1088   :  { %v1567_v60 = vmul.f32 %v2534_v10, %v3043_v15  ;;  %v1543_v9 = vpop.f32.mrb[27].mxu0  ;;  %v2232_v10 = vld [vmem:[%s3509_s4 + $0xf8] sm:$0xff] }
0x1089   :  { %v1566_v17 = vmul.f32 %v3043_v15, %v1543_v9  ;;  %2734 = vmatprep.subr.bf16.mxu0 %v2733_v27  ;;  %v2233_v9 = vld [vmem:[%s3509_s4 + $0x100] sm:$0xff] }
0x108a   :  { %v1573_v33 = vadd.f32 %v1571_v19, %v1567_v60  ;;  %v2737_v19 = vpack.c.bf16 %v2230_v30, %v2229_v28 }
0x108b   :  { %v1572_v34 = vadd.f32 %v1570_v31, %v1566_v17  ;;  %v2537_v35 = vpop.f32.mrb[28].mxu0  ;;  %2736 = vmatpush3.bf16.msra.mxu0 %v2733_v27  ;;  %v2231_v31 = vld [vmem:[%s3509_s4 + $0xf0] sm:$0xff]  ;;  %v2234_v17 = vld [vmem:[%s3509_s4 + $0x108] sm:$0xff] }
0x108c   :  { %v1569_v36 = vmul.f32 %v2537_v35, %v3050_v20  ;;  %v1553_v37 = vpop.f32.mrb[29].mxu0  ;;  %2738 = vmatprep.subr.bf16.mxu0 %v2737_v19  ;;  %v2741_v60 = vpack.c.bf16 %v2232_v10, %v2231_v31  ;;  %v2236_v35 = vld [vmem:[%s3509_s4 + $0x118] sm:$0xff] }
0x108d   :  { %v1568_v39 = vmul.f32 %v3050_v20, %v1553_v37  ;;  %v2237_v37 = vld [vmem:[%s3509_s4 + $0x120] sm:$0xff] }
0x108e   :  { %v1575_v40 = vadd.f32 %v1573_v33, %v1569_v36  ;;  %v2745_v33 = vpack.c.bf16 %v2234_v17, %v2233_v9 }
0x108f   :  { %v1574_v2 = vadd.f32 %v1572_v34, %v1568_v39  ;;  %2740 = vmatpush3.bf16.msra.mxu0 %v2737_v19  ;;  %v2235_v34 = vld [vmem:[%s3509_s4 + $0x110] sm:$0xff]  ;;  %v2238_v39 = vld [vmem:[%s3509_s4 + $0x128] sm:$0xff] }
0x1090   :  { %2742 = vmatprep.subr.bf16.mxu0 %v2741_v60  ;;  %v2749_v36 = vpack.c.bf16 %v2236_v35, %v2235_v34 }
0x1091   :  { %2546 = vmatprep.mubr.msk.f32.mxu1 %vm132_vm3, %v1574_v2  ;;  %v2239_v2 = vld [vmem:[%s3509_s4 + $0x130] sm:$0xff] }
0x1092   :  { %2547 = vmatmul.mubr.msk.f32.vlgmr.msra.gmra.mrb[14].mxu1 %vm132_vm3, %v1575_v40  ;;  %v2753_v40 = vpack.c.bf16 %v2238_v39, %v2237_v37  ;;  %v2241_v37 = vld [vmem:[%s3507_s5 + $0x13] ss:$0 sm:$0xff] }
0x1093   :  { %2744 = vmatpush3.bf16.msra.mxu0 %v2741_v60 }
0x1094   :  { %2746 = vmatprep.subr.bf16.mxu0 %v2745_v33 }
0x1097   :  { %2748 = vmatpush3.bf16.msra.mxu0 %v2745_v33 }
0x1098   :  { %2750 = vmatprep.subr.bf16.mxu0 %v2749_v36 }
0x109b   :  { %2752 = vmatpush3.bf16.msra.mxu0 %v2749_v36 }
0x109c   :  { %2754 = vmatprep.subr.bf16.mxu0 %v2753_v40 }
0x109f   :  { %2756 = vmatpush3.bf16.msra.mxu0 %v2753_v40 }
0x1165   :  { %v2548_v42 = vpop.f32.mrb[14].mxu1 }
0x1166   :  { %v1657_v15 = vpop.f32.mrb[15].mxu1  ;;  %v1663_v45 = vadd.f32 %v2548_v42, %v2213_v12 }
0x1167   :  { %v1658_v44 = vadd.f32 %v2213_v12, %v1657_v15  ;;  %v2240_v12 = vld [vmem:[%s3509_s4 + $0x138] sm:$0xff]  ;;  %v2222_v15 = vld [vmem:[%s3507_s5 + $0x12] ss:$0 sm:$0xff] }
0x1168   :  { %v1667_v20 = vadd.f32 %v1663_v45, %v3280_v7  ;;  %v2218_v7 = vld [vmem:[%s3506_s3 + $0x48] sm:$0xff]  ;;  %v2757_v42 = vpack.c.bf16 %v2240_v12, %v2239_v2 }
0x1169   :  { %v1666_v41 = vadd.f32 %v1658_v44, %v3276_v5  ;;  %v2721_v55 = vpack.c.bf16 %v2219_v32, %v2218_v7 }
0x116a   :  { %v1671_v47 = vsel %vm132_vm3, %v1667_v20, 0.0  ;;  %2758 = vmatprep.subr.bf16.mxu0 %v2757_v42 }
0x116b   :  { %v1668_v46 = vsel %vm132_vm3, %v1666_v41, 0.0  ;;  %2722 = vmatprep.subr.bf16.mxu1 %v2721_v55  ;;  %2760 = vmatpush3.bf16.msra.mxu0 %v2757_v42 }
0x116c   :  { %1669 = vadd.xlane.f32.xlu0 %v1668_v46  ;;  %2724 = vmatpush3.bf16.msra.mxu1 %v2721_v55 }
0x116d   :  { %2726 = vmatprep.subr.bf16.mxu1 %v2725_v57 }
0x1170   :  { %1672 = vadd.xlane.f32.xlu0 %v1671_v47  ;;  %2728 = vmatpush3.bf16.msra.mxu1 %v2725_v57 }
0x11f9   :  { %v1670_v23 = vpop.xlane.xlu0 %1669 }
0x11fa   :  { %v1674_v49 = vmul.f32 0.03125, %v1670_v23 }
0x11fc   :  { %v1676_v24 = vsub.f32 %v1666_v41, %v1674_v49 }
0x11fd   :  { %v1673_v50 = vpop.xlane.xlu0 %1672 }
0x11fe   :  { %v1675_v52 = vmul.f32 0.03125, %v1673_v50  ;;  %v1678_v53 = vmul.f32 %v1676_v24, %v1676_v24 }
0x1200   :  { %v1677_v29 = vsub.f32 %v1667_v20, %v1675_v52  ;;  %v1680_v54 = vsel %vm132_vm3, %v1678_v53, 0.0 }
0x1201   :  { %1681 = vadd.xlane.f32.xlu0 %v1680_v54 }
0x1202   :  { %v1679_v21 = vmul.f32 %v1677_v29, %v1677_v29 }
0x1204   :  { %v1683_v5 = vsel %vm132_vm3, %v1679_v21, 0.0 }
0x1205   :  { %1684 = vadd.xlane.f32.xlu0 %v1683_v5 }
0x128e   :  { %v1682_v59 = vpop.xlane.xlu0 %1681 }
0x128f   :  { %v1686_v61 = vmul.f32 0.03125, %v1682_v59 }
0x1291   :  { %v1688_v43 = vadd.f32 1e-05, %v1686_v61 }
0x1292   :  { %v1685_v4 = vpop.xlane.xlu0 %1684 }
0x1293   :  { %2881 = vrsqrt.f32 %v1688_v43  ;;  %v1687_v62 = vmul.f32 0.03125, %v1685_v4 }
0x1295   :  { %v1689_v63 = vadd.f32 1e-05, %v1687_v62 }
0x1297   :  { %2883 = vrsqrt.f32 %v1689_v63 }
0x129d   :  { %v2882_v48 = vpop.eup %2881 }
0x129e   :  { %v1692_v1 = vmul.f32 %v2882_v48, %v1676_v24 }
0x12a0   :  { %v1698_v3 = vmul.f32 %v2216_v0, %v1692_v1 }
0x12a1   :  { %v2884_v6 = vpop.eup %2883 }
0x12a2   :  { %v1693_v8 = vmul.f32 %v2884_v6, %v1677_v29  ;;  %v3398_v11 = vadd.f32 %v2217_v51, %v1698_v3 }
0x12a4   :  { %v1699_v13 = vmul.f32 %v2216_v0, %v1693_v8  ;;  %2557 = vmatprep.mubr.msk.f32.mxu1 %vm132_vm3, %v3398_v11 }
0x12a6   :  { %v3402_v14 = vadd.f32 %v2217_v51, %v1699_v13 }
0x12a8   :  { %2558 = vmatmul.mubr.msk.f32.vlgmr.msra.gmra.mrb[16].mxu1 %vm132_vm3, %v3402_v14 }
0x12a9   :  { %2599 = vmatprep.mubr.msk.f32.mxu1 %vm2902_vm5, %v2898_v18 }
0x137b   :  { %v2559_v45 = vpop.f32.mrb[16].mxu1 }
0x137c   :  { %v1792_v44 = vadd.f32 %v2559_v45, %v2222_v15  ;;  %v1786_v41 = vpop.f32.mrb[17].mxu1 }
0x137d   :  { %v1787_v46 = vadd.f32 %v2222_v15, %v1786_v41 }
0x137e   :  { %v1798_v20 = vmul.f32 0.70710677, %v1792_v44  ;;  %v1796_v34 = vmul.f32 0.5, %v1792_v44 }
0x137f   :  { %v1797_v47 = vmul.f32 0.70710677, %v1787_v46  ;;  %v1795_v17 = vmul.f32 0.5, %v1787_v46 }
0x1380   :  { %v1800_v23 = vand.u32 2147483647, %v1798_v20  ;;  %vm1840_vm2 = vcmp.ge.f32.partialorder %v1798_v20, 0.0 }
0x1381   :  { %v1799_v49 = vand.u32 2147483647, %v1797_v47  ;;  %vm1839_vm4 = vcmp.ge.f32.partialorder %v1797_v47, 0.0 }
0x1382   :  { %v1802_v24 = vmul.f32 0.3275911, %v1800_v23  ;;  %v1828_v29 = vsub.f32 0.0, %v1800_v23 }
0x1383   :  { %v1801_v50 = vmul.f32 0.3275911, %v1799_v49  ;;  %v1827_v54 = vsub.f32 0.0, %v1799_v49 }
0x1384   :  { %v1804_v52 = vadd.f32 1.0, %v1802_v24  ;;  %v1830_v5 = vmul.f32 %v1828_v29, %v1800_v23 }
0x1385   :  { %v1803_v53 = vadd.f32 1.0, %v1801_v50  ;;  %v1829_v55 = vmul.f32 %v1827_v54, %v1799_v49 }
0x1386   :  { %2885 = vrcp.f32 %v1804_v52  ;;  %v1833_v57 = vmul.f32 1.442695, %v1830_v5 }
0x1387   :  { %2887 = vrcp.f32 %v1803_v53  ;;  %v1831_v43 = vmul.f32 1.442695, %v1829_v55  ;;  %v2242_v55 = vld [vmem:[%s3507_s5 + $0x16] ss:$0 sm:$0xff] }
0x1388   :  { %2889 = vpow2.f32 %v1833_v57 }
0x1389   :  { %2891 = vpow2.f32 %v1831_v43 }
0x1390   :  { %v2886_v21 = vpop.eup %2885 }
0x1391   :  { %v2888_v7 = vpop.eup %2887  ;;  %v1810_v32 = vmul.f32 1.0614054, %v2886_v21 }
0x1392   :  { %v1809_v56 = vmul.f32 1.0614054, %v2888_v7  ;;  %v2890_v16 = vpop.eup %2889 }
0x1393   :  { %v1812_v38 = vadd.f32 -1.4531521, %v1810_v32  ;;  %v2892_v25 = vpop.eup %2891 }
0x1394   :  { %v1811_v59 = vadd.f32 -1.4531521, %v1809_v56 }
0x1395   :  { %v1814_v61 = vmul.f32 %v2886_v21, %v1812_v38  ;;  %v2243_v38 = vld [vmem:[%s3507_s5 + $0x17] ss:$0 sm:$0xff] }
0x1396   :  { %v1813_v4 = vmul.f32 %v2888_v7, %v1811_v59 }
0x1397   :  { %v1816_v62 = vadd.f32 1.4214138, %v1814_v61 }
0x1398   :  { %v1815_v63 = vadd.f32 1.4214138, %v1813_v4 }
0x1399   :  { %v1818_v48 = vmul.f32 %v2886_v21, %v1816_v62 }
0x139a   :  { %v1817_v0 = vmul.f32 %v2888_v7, %v1815_v63  ;;  %v2057_v63 = vld [vmem:[%s3507_s5 + $0x18] sm:$0xff] }
0x139b   :  { %v1820_v1 = vadd.f32 -0.28449672, %v1818_v48  ;;  %v2058_v48 = vld [vmem:[%s3507_s5 + $0x20] sm:$0xff] }
0x139c   :  { %v1819_v51 = vadd.f32 -0.28449672, %v1817_v0 }
0x139d   :  { %v1822_v3 = vmul.f32 %v2886_v21, %v1820_v1  ;;  %v180_v1 = vld [vmem:[%s3508_s1 + $0x40] sm:$0x3] }
0x139e   :  { %v1821_v6 = vmul.f32 %v2888_v7, %v1819_v51  ;;  %v2765_v51 = vpack.c.bf16 %v2058_v48, %v2057_v63 }
0x139f   :  { %v1824_v8 = vadd.f32 0.2548296, %v1822_v3  ;;  %v2059_v3 = vld [vmem:[%s3507_s5 + $0x28] sm:$0xff] }
0x13a0   :  { %v1823_v13 = vadd.f32 0.2548296, %v1821_v6  ;;  %v2060_v6 = vld [vmem:[%s3507_s5 + $0x30] sm:$0xff] }
0x13a1   :  { %v1826_v58 = vmul.f32 %v2886_v21, %v1824_v8  ;;  %v2768_v8 = vpack.c.bf16 %v2060_v6, %v2059_v3 }
0x13a2   :  { %v1825_v22 = vmul.f32 %v2888_v7, %v1823_v13 }
0x13a3   :  { %v1836_v26 = vmul.f32 %v2890_v16, %v1826_v58 }
0x13a4   :  { %v1835_v27 = vmul.f32 %v2892_v25, %v1825_v22 }
0x13a5   :  { %v1838_v28 = vsub.f32 1.0, %v1836_v26 }
0x13a6   :  { %v1837_v30 = vsub.f32 1.0, %v1835_v27 }
0x13a7   :  { %v1842_v19 = vsub.f32 0.0, %v1838_v28 }
0x13a8   :  { %v1841_v31 = vsub.f32 0.0, %v1837_v30 }
0x13a9   :  { %v1844_v10 = vsel %vm1840_vm2, %v1838_v28, %v1842_v19 }
0x13aa   :  { %v1846_v60 = vadd.f32 1.0, %v1844_v10  ;;  %v1843_v9 = vsel %vm1839_vm4, %v1837_v30, %v1841_v31 }
0x13ab   :  { %v1845_v33 = vadd.f32 1.0, %v1843_v9 }
0x13ac   :  { %v1848_v36 = vmul.f32 %v1846_v60, %v1796_v34 }
0x13ad   :  { %v1847_v35 = vmul.f32 %v1845_v33, %v1795_v17 }
0x13af   :  { %2592 = vmatprep.mubr.f32.mxu0 %v1847_v35 }
0x13b0   :  { %2593 = vmatmul.mubr.f32.vlgmr.msra.gmra.mrb[30].mxu0 %v1848_v36 }
0x1483   :  { %v2594_v39 = vpop.f32.mrb[30].mxu0 }
0x1484   :  { %v1941_v40 = vadd.f32 %v2594_v39, %v2241_v37  ;;  %v1935_v2 = vpop.f32.mrb[31].mxu0 }
0x1485   :  { %v1936_v12 = vadd.f32 %v2241_v37, %v1935_v2 }
0x1486   :  { %v1945_v42 = vadd.f32 %v1941_v40, %v3402_v14 }
0x1487   :  { %v1944_v15 = vadd.f32 %v1936_v12, %v3398_v11  ;;  %v2901_v11 = vmov 0.0|0.0  }
0x1488   :  { %v1949_v45 = vsel %vm132_vm3, %v1945_v42, 0.0  ;;  %2761 = vmatprep.subr.bf16.mxu1 %v2901_v11 }
0x1489   :  { %1950 = vadd.xlane.f32.xlu0 %v1949_v45  ;;  %v1946_v44 = vsel %vm132_vm3, %v1944_v15, 0.0 }
0x148a   :  { %1947 = vadd.xlane.f32.xlu1 %v1946_v44 }
0x1516   :  { %v1951_v41 = vpop.xlane.xlu0 %1950 }
0x1517   :  { %v1953_v46 = vmul.f32 0.03125, %v1951_v41  ;;  %v1948_v20 = vpop.xlane.xlu1 %1947 }
0x1518   :  { %v1952_v47 = vmul.f32 0.03125, %v1948_v20 }
0x1519   :  { %v1955_v23 = vsub.f32 %v1945_v42, %v1953_v46 }
0x151a   :  { %v1954_v49 = vsub.f32 %v1944_v15, %v1952_v47 }
0x151b   :  { %v1957_v52 = vmul.f32 %v1955_v23, %v1955_v23 }
0x151c   :  { %v1956_v24 = vmul.f32 %v1954_v49, %v1954_v49 }
0x151d   :  { %v1961_v14 = vsel %vm132_vm3, %v1957_v52, 0.0 }
0x151e   :  { %v1958_v50 = vsel %vm132_vm3, %v1956_v24, 0.0 }
0x151f   :  { %1959 = vadd.xlane.f32.xlu0 %v1958_v50 }
0x1523   :  { %1962 = vadd.xlane.f32.xlu0 %v1961_v14 }
0x15ac   :  { %v1960_v53 = vpop.xlane.xlu0 %1959 }
0x15ad   :  { %v1964_v29 = vmul.f32 0.03125, %v1960_v53 }
0x15af   :  { %v1966_v54 = vadd.f32 1e-05, %v1964_v29 }
0x15b0   :  { %v1963_v21 = vpop.xlane.xlu0 %1962 }
0x15b1   :  { %2893 = vrsqrt.f32 %v1966_v54  ;;  %v1965_v5 = vmul.f32 0.03125, %v1963_v21 }
0x15b3   :  { %v1967_v7 = vadd.f32 1e-05, %v1965_v5 }
0x15b5   :  { %2895 = vrsqrt.f32 %v1967_v7 }
0x15bb   :  { %v2894_v32 = vpop.eup %2893 }
0x15bc   :  { %v1970_v56 = vmul.f32 %v2894_v32, %v1954_v49 }
0x15be   :  { %v1976_v57 = vmul.f32 %v2242_v55, %v1970_v56 }
0x15bf   :  { %v2896_v59 = vpop.eup %2895 }
0x15c0   :  { %v1971_v61 = vmul.f32 %v2896_v59, %v1955_v23  ;;  %v1982_v43 = vadd.f32 %v2243_v38, %v1976_v57 }
0x15c2   :  { %v1977_v4 = vmul.f32 %v2242_v55, %v1971_v61  ;;  %2134 = vst.msk [vmem:[%s3510_s6] sm:$0xff] %vm132_vm3, %v1982_v43 }
0x15c4   :  { %v1983_v62 = vadd.f32 %v2243_v38, %v1977_v4 }
0x15c6   :  { %v2762_v0 = vpack.c.bf16 %v1983_v62, %v1982_v43  ;;  %2135 = vst.msk [vmem:[%s3510_s6 + $0x8] sm:$0xff] %vm132_vm3, %v1983_v62 }
0x15c8   :  { %2763 = vmatpush3.bf16.msra.mxu1 %v2762_v0 }
0x15c9   :  { %2764 = vmatprep.subr.bf16.mxu1 %v2901_v11 }
0x15cb   :  { %2600 = vmatmul.mubr.msk.f32.vlgmr.msra.gmra.mrb[18].mxu1 %vm447_vm15, %v180_v1 }
0x15cc   :  { %2766 = vmatpush3.bf16.msra.mxu1 %v2765_v51  ;;  %2610 = vmatprep.mubr.msk.f32.mxu1 %vm2902_vm5, %v2898_v18 }
0x15cd   :  { %2767 = vmatprep.subr.bf16.mxu1 %v2901_v11 }
0x15d0   :  { %2769 = vmatpush3.bf16.msra.mxu1 %v2768_v8 }
0x169e   :  { %v2053_v13 = vpop.f32.mrb[18].mxu1 }
0x169f   :  { %v2601_v58 = vpop.f32.mrb[19].mxu1  ;;  %2611 = vmatmul.mubr.msk.f32.vlgmr.msra.gmra.mrb[20].mxu1 %vm132_vm3, %v2053_v13 }
0x1772   :  { %v2130_v16 = vpop.f32.mrb[20].mxu1 }
0x1773   :  { %2137 = vst.msk [vmem:[%s3510_s6 + $0x10] sm:$0x3] %vm2136_vm6, %v2130_v16  ;;  %v2612_v22 = vpop.f32.mrb[21].mxu1 }

</bundles_post_ra>
